<compile_context>
chip_gen: v7x
topology: tpu7x:2x2x1
jax: 0.10.0
libtpu: 0.0.40
codegen_flags: <defaults>
</compile_context>

<pallas_src>
import functools

import numpy as np
import jax
import jax.numpy as jnp
from jax import lax
from jax.experimental import pallas as pl
from jax.experimental.pallas import tpu as pltpu

LANES = 128


def _round_up(x, m):
    return (x + m - 1) // m * m


# ----------------------------- Pallas kernel --------------------------------

def _fused_conv_kernel(x_ref, w_ref, b_ref, o_ref, *, kh_kw, wp):
    """One padded input sample -> one (L, Cout_pad) output slab.

    x_ref: (1, Hp*Wp, Cin)          bf16  flattened, spatially padded NHWC sample
    w_ref: (KH*KW, Cin, Cout_pad)   bf16  kernel taps, Cout zero-padded to lanes
    b_ref: (1, Cout_pad)            f32
    o_ref: (1, L, Cout_pad)         f32   L = (Ho-1)*SH*Wp + (Wo-1)*SW + 1
    """
    KH, KW = kh_kw
    L = o_ref.shape[1]
    cpad = o_ref.shape[2]

    # f32 accumulator initialized with the bias; single store at the end.
    acc = jnp.broadcast_to(b_ref[...], (L, cpad)).astype(jnp.float32)

    # KH*KW shifted matmuls on the MXU (statically unrolled), f32 accumulate.
    for kh in range(KH):
        for kw in range(KW):
            off = kh * wp + kw                       # static shift for this tap
            a = x_ref[0, off:off + L, :]             # (L, Cin) contiguous slice
            acc = acc + jnp.dot(a, w_ref[kh * KW + kw],
                                preferred_element_type=jnp.float32)

    o_ref[0, :, :] = acc                             # one lane-dense f32 store


# ----------------------------- JAX glue --------------------------------------

def memristive_weights(w, cfg):
    """Exact replication of MemristiveConv2d.memristive_weights.

    Note: in the non-ideal, no-disturbance path the module's algebra reduces to
    y = w**2 (the sign of negative weights is lost); this is replicated
    faithfully.  As in the PyTorch module, an all-zero weight tensor would
    divide by max|w| = 0.
    """
    if cfg["ideal"]:
        return w
    k_V = cfg["k_V"]
    G_on = cfg["G_on"]
    G_off = cfg["G_off"]
    V = k_V * w
    max_w = jnp.max(jnp.abs(w))
    k_G = (G_on - G_off) / max_w
    k_I = k_V * k_G
    G_eff = k_G * w
    G_pos = G_off + jnp.maximum(G_eff, 0.0)
    G_neg = G_off - jnp.minimum(G_eff, 0.0)
    G = G_pos - G_neg
    # TODO(synk): disturb_conductance_fixed / disturb_conductance_device are
    # external, undefined functions; only the disturb_conductance=False path
    # is implemented.
    I_total = G * V
    return I_total / k_I


def memristive_conv2d_forward(x, weight, bias, cfg, stride=(1, 1), padding=(0, 0),
                              out_format="NCHW", compute_dtype=jnp.bfloat16):
    """Forward pass of MemristiveConv2d.  x: NCHW, weight: OIHW, bias: (Cout,)."""
    N, Cin, H, W = x.shape
    Cout, Cin_w, KH, KW = weight.shape
    assert Cin == Cin_w
    SH, SW = stride
    PH, PW = padding
    Hp, Wp = H + 2 * PH, W + 2 * PW
    Ho = (Hp - KH) // SH + 1
    Wo = (Wp - KW) // SW + 1
    L = (Ho - 1) * SH * Wp + (Wo - 1) * SW + 1      # accumulator rows per sample
    cpad = _round_up(Cout, LANES)                   # lane-dense output channels

    # Memristive weight transform in full precision, bf16 only for the MXU feed.
    w_eff = memristive_weights(weight, cfg)

    # Input: NCHW -> NHWC (channels on lanes), spatial zero-pad, flatten H*W.
    x_nhwc = jnp.transpose(x, (0, 2, 3, 1))
    x_pad = jnp.pad(x_nhwc, ((0, 0), (PH, PH), (PW, PW), (0, 0)))
    x_flat = x_pad.reshape(N, Hp * Wp, Cin).astype(compute_dtype)

    # Weights: OIHW -> (KH*KW, Cin, Cout), zero-pad Cout to a lane multiple.
    w_taps = jnp.transpose(w_eff, (2, 3, 1, 0)).reshape(KH * KW, Cin, Cout)
    w_taps = jnp.pad(w_taps, ((0, 0), (0, 0), (0, cpad - Cout))).astype(compute_dtype)
    b_pad = jnp.pad(bias, (0, cpad - Cout)).reshape(1, cpad).astype(jnp.float32)

    kernel = functools.partial(_fused_conv_kernel, kh_kw=(KH, KW), wp=Wp)

    # Explicit VMEM budget (double-buffered input/output blocks + weights),
    # clamped so it is valid on v5e / v6e / v7x scoped-VMEM limits.
    itemsize = jnp.dtype(compute_dtype).itemsize
    block_bytes = (2 * Hp * Wp * Cin * itemsize        # double-buffered A blocks
                   + 2 * L * cpad * 4                  # double-buffered O blocks
                   + L * cpad * 4                      # in-kernel f32 accumulator
                   + KH * KW * Cin * cpad * itemsize   # taps (fetched once)
                   + cpad * 4)                         # bias
    vmem_limit = int(min(max(4 * block_bytes, 32 * 2**20), 48 * 2**20))

    out_flat = pl.pallas_call(
        kernel,
        out_shape=jax.ShapeDtypeStruct((N, L, cpad), jnp.float32),
        grid_spec=pltpu.PrefetchScalarGridSpec(
            num_scalar_prefetch=0,
            grid=(N,),
            in_specs=[
                pl.BlockSpec((1, Hp * Wp, Cin), lambda n: (n, 0, 0)),     # sample
                pl.BlockSpec((KH * KW, Cin, cpad), lambda n: (0, 0, 0)),  # taps
                pl.BlockSpec((1, cpad), lambda n: (0, 0)),                # bias
            ],
            out_specs=pl.BlockSpec((1, L, cpad), lambda n: (n, 0, 0)),
        ),
        compiler_params=pltpu.CompilerParams(
            dimension_semantics=("parallel",),
            vmem_limit_bytes=vmem_limit,
        ),
    )(x_flat, w_taps, b_pad)

    # Extract real rows: output position (ho, wo) lives at row ho*SH*Wp + wo*SW.
    pad_rows = Ho * SH * Wp - L
    o = jnp.pad(out_flat, ((0, 0), (0, pad_rows), (0, 0)))
    o = o.reshape(N, Ho, SH * Wp, cpad)
    o = o[:, :, : (Wo - 1) * SW + 1 : SW, :Cout]      # (N, Ho, Wo, Cout) NHWC
    if out_format == "NHWC":
        return o
    return jnp.transpose(o, (0, 3, 1, 2))             # NCHW to match the module


# ----------------------------- demo / check ----------------------------------

if __name__ == "__main__":
    # module config (non-ideal memristive path, no disturbance)
    memristive_config = dict(
        ideal=False,
        disturb_conductance=False,
        disturb_mode="fixed",
        disturbance_probability=0.1,
        G_off=1e-4, G_on=1e-3, R=2.0e3, c=1e-4, d_epsilon=1e-2, k_V=0.5,
    )

    in_channels, out_channels = 4, 8
    kernel_size = (3, 3)
    stride = (1, 1)
    padding = (1, 1)

    key = jax.random.PRNGKey(0)
    kx, kw = jax.random.split(key)

    # deterministic parameter init matching the module's __init__:
    #   weight ~ N(0, stdv), stdv = 1/sqrt(Cin * prod(kernel)); bias = 0
    stdv = 1.0 / np.sqrt(in_channels * np.prod(kernel_size))
    weight = stdv * jax.random.normal(
        kw, (out_channels, in_channels, *kernel_size), dtype=jnp.float32)
    bias = jnp.zeros((out_channels,), dtype=jnp.float32)

    # example input (NCHW), small shapes
    x = jax.random.normal(kx, (2, in_channels, 16, 16), dtype=jnp.float32)

    out = memristive_conv2d_forward(x, weight, bias, memristive_config,
                                    stride=stride, padding=padding)
    out = jax.block_until_ready(out)
    assert out.shape == (2, out_channels, 16, 16)

    w_eff = memristive_weights(weight, memristive_config)
    pad = [(padding[0], padding[0]), (padding[1], padding[1])]

    # Reference 1: XLA conv over the *same bf16-rounded* operands (isolates the
    # kernel math from the intentional bf16 operand rounding).
    x_r = x.astype(jnp.bfloat16).astype(jnp.float32)
    w_r = w_eff.astype(jnp.bfloat16).astype(jnp.float32)
    ref_same = lax.conv_general_dilated(
        x_r, w_r, window_strides=stride, padding=pad,
        dimension_numbers=("NCHW", "OIHW", "NCHW"),
        precision=lax.Precision.HIGHEST) + bias[None, :, None, None]
    np.testing.assert_allclose(np.asarray(out), np.asarray(ref_same),
                               rtol=1e-3, atol=1e-4)

    # Reference 2: full-f32 module semantics; looser tolerance accounts for the
    # bf16 operand rounding (accumulation stays f32 in the kernel).
    ref_f32 = lax.conv_general_dilated(
        x, w_eff, window_strides=stride, padding=pad,
        dimension_numbers=("NCHW", "OIHW", "NCHW"),
        precision=lax.Precision.HIGHEST) + bias[None, :, None, None]
    np.testing.assert_allclose(np.asarray(out), np.asarray(ref_f32),
                               rtol=5e-2, atol=5e-2)

    print("KERNEL_OK")
</pallas_src>

<mosaic_0001>
module attributes {stable_mosaic.version = 11 : i64} {
  func.func @_fused_conv_kernel(%arg0: i32, %arg1: memref<1x324x4xbf16, #tpu.memory_space<vmem>>, %arg2: memref<9x4x128xbf16, #tpu.memory_space<vmem>>, %arg3: memref<1x128xf32, #tpu.memory_space<vmem>>, %arg4: memref<1x286x128xf32, #tpu.memory_space<vmem>>) attributes {dimension_semantics = [#tpu.dimension_semantics<parallel>], iteration_bounds = array<i64: 2>, scalar_prefetch = 0 : i64, scratch_operands = 0 : i64, tpu.core_type = #tpu.core_type<tc>, window_params = [{transform_indices = @transform_0, window_bounds = array<i64: 1, 324, 4>}, {pipeline_mode = #tpu.pipeline_mode<synchronous>, transform_indices = @transform_1, window_bounds = array<i64: 9, 4, 128>}, {pipeline_mode = #tpu.pipeline_mode<synchronous>, transform_indices = @transform_2, window_bounds = array<i64: 1, 128>}, {transform_indices = @transform_3, window_bounds = array<i64: 1, 286, 128>}]} {
    %c0 = arith.constant 0 : index
    %c0_0 = arith.constant 0 : index
    %0 = vector.load %arg3[%c0, %c0_0] : memref<1x128xf32, #tpu.memory_space<vmem>>, vector<1x128xf32>
    %1 = vector.shape_cast %0 : vector<1x128xf32> to vector<1x128xf32>
    %2 = vector.broadcast %1 : vector<1x128xf32> to vector<286x128xf32>
    %c0_1 = arith.constant 0 : index
    %c0_2 = arith.constant 0 : index
    %c0_3 = arith.constant 0 : index
    %3 = vector.load %arg1[%c0_1, %c0_2, %c0_3] : memref<1x324x4xbf16, #tpu.memory_space<vmem>>, vector<1x286x4xbf16>
    %4 = vector.shape_cast %3 : vector<1x286x4xbf16> to vector<286x4xbf16>
    %c0_4 = arith.constant 0 : index
    %c0_5 = arith.constant 0 : index
    %c0_6 = arith.constant 0 : index
    %5 = vector.load %arg2[%c0_4, %c0_5, %c0_6] : memref<9x4x128xbf16, #tpu.memory_space<vmem>>, vector<1x4x128xbf16>
    %6 = vector.shape_cast %5 : vector<1x4x128xbf16> to vector<4x128xbf16>
    %cst = arith.constant dense<0.000000e+00> : vector<286x128xf32>
    %7 = tpu.matmul %4, %6, %cst {dimension_numbers = #tpu.dot_dimension_numbers<[1], [0], [0], [1], [0, 0, 1, 1], [], []>} : vector<286x4xbf16>, vector<4x128xbf16>, vector<286x128xf32> -> vector<286x128xf32>
    %8 = arith.addf %2, %7 : vector<286x128xf32>
    %c0_7 = arith.constant 0 : index
    %c1 = arith.constant 1 : index
    %c0_8 = arith.constant 0 : index
    %9 = vector.load %arg1[%c0_7, %c1, %c0_8] : memref<1x324x4xbf16, #tpu.memory_space<vmem>>, vector<1x286x4xbf16>
    %10 = vector.shape_cast %9 : vector<1x286x4xbf16> to vector<286x4xbf16>
    %c1_9 = arith.constant 1 : index
    %c0_10 = arith.constant 0 : index
    %c0_11 = arith.constant 0 : index
    %11 = vector.load %arg2[%c1_9, %c0_10, %c0_11] : memref<9x4x128xbf16, #tpu.memory_space<vmem>>, vector<1x4x128xbf16>
    %12 = vector.shape_cast %11 : vector<1x4x128xbf16> to vector<4x128xbf16>
    %cst_12 = arith.constant dense<0.000000e+00> : vector<286x128xf32>
    %13 = tpu.matmul %10, %12, %cst_12 {dimension_numbers = #tpu.dot_dimension_numbers<[1], [0], [0], [1], [0, 0, 1, 1], [], []>} : vector<286x4xbf16>, vector<4x128xbf16>, vector<286x128xf32> -> vector<286x128xf32>
    %14 = arith.addf %8, %13 : vector<286x128xf32>
    %c0_13 = arith.constant 0 : index
    %c2 = arith.constant 2 : index
    %c0_14 = arith.constant 0 : index
    %15 = vector.load %arg1[%c0_13, %c2, %c0_14] : memref<1x324x4xbf16, #tpu.memory_space<vmem>>, vector<1x286x4xbf16>
    %16 = vector.shape_cast %15 : vector<1x286x4xbf16> to vector<286x4xbf16>
    %c2_15 = arith.constant 2 : index
    %c0_16 = arith.constant 0 : index
    %c0_17 = arith.constant 0 : index
    %17 = vector.load %arg2[%c2_15, %c0_16, %c0_17] : memref<9x4x128xbf16, #tpu.memory_space<vmem>>, vector<1x4x128xbf16>
    %18 = vector.shape_cast %17 : vector<1x4x128xbf16> to vector<4x128xbf16>
    %cst_18 = arith.constant dense<0.000000e+00> : vector<286x128xf32>
    %19 = tpu.matmul %16, %18, %cst_18 {dimension_numbers = #tpu.dot_dimension_numbers<[1], [0], [0], [1], [0, 0, 1, 1], [], []>} : vector<286x4xbf16>, vector<4x128xbf16>, vector<286x128xf32> -> vector<286x128xf32>
    %20 = arith.addf %14, %19 : vector<286x128xf32>
    %c0_19 = arith.constant 0 : index
    %c18 = arith.constant 18 : index
    %c0_20 = arith.constant 0 : index
    %21 = vector.load %arg1[%c0_19, %c18, %c0_20] : memref<1x324x4xbf16, #tpu.memory_space<vmem>>, vector<1x286x4xbf16>
    %22 = vector.shape_cast %21 : vector<1x286x4xbf16> to vector<286x4xbf16>
    %c3 = arith.constant 3 : index
    %c0_21 = arith.constant 0 : index
    %c0_22 = arith.constant 0 : index
    %23 = vector.load %arg2[%c3, %c0_21, %c0_22] : memref<9x4x128xbf16, #tpu.memory_space<vmem>>, vector<1x4x128xbf16>
    %24 = vector.shape_cast %23 : vector<1x4x128xbf16> to vector<4x128xbf16>
    %cst_23 = arith.constant dense<0.000000e+00> : vector<286x128xf32>
    %25 = tpu.matmul %22, %24, %cst_23 {dimension_numbers = #tpu.dot_dimension_numbers<[1], [0], [0], [1], [0, 0, 1, 1], [], []>} : vector<286x4xbf16>, vector<4x128xbf16>, vector<286x128xf32> -> vector<286x128xf32>
    %26 = arith.addf %20, %25 : vector<286x128xf32>
    %c0_24 = arith.constant 0 : index
    %c19 = arith.constant 19 : index
    %c0_25 = arith.constant 0 : index
    %27 = vector.load %arg1[%c0_24, %c19, %c0_25] : memref<1x324x4xbf16, #tpu.memory_space<vmem>>, vector<1x286x4xbf16>
    %28 = vector.shape_cast %27 : vector<1x286x4xbf16> to vector<286x4xbf16>
    %c4 = arith.constant 4 : index
    %c0_26 = arith.constant 0 : index
    %c0_27 = arith.constant 0 : index
    %29 = vector.load %arg2[%c4, %c0_26, %c0_27] : memref<9x4x128xbf16, #tpu.memory_space<vmem>>, vector<1x4x128xbf16>
    %30 = vector.shape_cast %29 : vector<1x4x128xbf16> to vector<4x128xbf16>
    %cst_28 = arith.constant dense<0.000000e+00> : vector<286x128xf32>
    %31 = tpu.matmul %28, %30, %cst_28 {dimension_numbers = #tpu.dot_dimension_numbers<[1], [0], [0], [1], [0, 0, 1, 1], [], []>} : vector<286x4xbf16>, vector<4x128xbf16>, vector<286x128xf32> -> vector<286x128xf32>
    %32 = arith.addf %26, %31 : vector<286x128xf32>
    %c0_29 = arith.constant 0 : index
    %c20 = arith.constant 20 : index
    %c0_30 = arith.constant 0 : index
    %33 = vector.load %arg1[%c0_29, %c20, %c0_30] : memref<1x324x4xbf16, #tpu.memory_space<vmem>>, vector<1x286x4xbf16>
    %34 = vector.shape_cast %33 : vector<1x286x4xbf16> to vector<286x4xbf16>
    %c5 = arith.constant 5 : index
    %c0_31 = arith.constant 0 : index
    %c0_32 = arith.constant 0 : index
    %35 = vector.load %arg2[%c5, %c0_31, %c0_32] : memref<9x4x128xbf16, #tpu.memory_space<vmem>>, vector<1x4x128xbf16>
    %36 = vector.shape_cast %35 : vector<1x4x128xbf16> to vector<4x128xbf16>
    %cst_33 = arith.constant dense<0.000000e+00> : vector<286x128xf32>
    %37 = tpu.matmul %34, %36, %cst_33 {dimension_numbers = #tpu.dot_dimension_numbers<[1], [0], [0], [1], [0, 0, 1, 1], [], []>} : vector<286x4xbf16>, vector<4x128xbf16>, vector<286x128xf32> -> vector<286x128xf32>
    %38 = arith.addf %32, %37 : vector<286x128xf32>
    %c0_34 = arith.constant 0 : index
    %c36 = arith.constant 36 : index
    %c0_35 = arith.constant 0 : index
    %39 = vector.load %arg1[%c0_34, %c36, %c0_35] : memref<1x324x4xbf16, #tpu.memory_space<vmem>>, vector<1x286x4xbf16>
    %40 = vector.shape_cast %39 : vector<1x286x4xbf16> to vector<286x4xbf16>
    %c6 = arith.constant 6 : index
    %c0_36 = arith.constant 0 : index
    %c0_37 = arith.constant 0 : index
    %41 = vector.load %arg2[%c6, %c0_36, %c0_37] : memref<9x4x128xbf16, #tpu.memory_space<vmem>>, vector<1x4x128xbf16>
    %42 = vector.shape_cast %41 : vector<1x4x128xbf16> to vector<4x128xbf16>
    %cst_38 = arith.constant dense<0.000000e+00> : vector<286x128xf32>
    %43 = tpu.matmul %40, %42, %cst_38 {dimension_numbers = #tpu.dot_dimension_numbers<[1], [0], [0], [1], [0, 0, 1, 1], [], []>} : vector<286x4xbf16>, vector<4x128xbf16>, vector<286x128xf32> -> vector<286x128xf32>
    %44 = arith.addf %38, %43 : vector<286x128xf32>
    %c0_39 = arith.constant 0 : index
    %c37 = arith.constant 37 : index
    %c0_40 = arith.constant 0 : index
    %45 = vector.load %arg1[%c0_39, %c37, %c0_40] : memref<1x324x4xbf16, #tpu.memory_space<vmem>>, vector<1x286x4xbf16>
    %46 = vector.shape_cast %45 : vector<1x286x4xbf16> to vector<286x4xbf16>
    %c7 = arith.constant 7 : index
    %c0_41 = arith.constant 0 : index
    %c0_42 = arith.constant 0 : index
    %47 = vector.load %arg2[%c7, %c0_41, %c0_42] : memref<9x4x128xbf16, #tpu.memory_space<vmem>>, vector<1x4x128xbf16>
    %48 = vector.shape_cast %47 : vector<1x4x128xbf16> to vector<4x128xbf16>
    %cst_43 = arith.constant dense<0.000000e+00> : vector<286x128xf32>
    %49 = tpu.matmul %46, %48, %cst_43 {dimension_numbers = #tpu.dot_dimension_numbers<[1], [0], [0], [1], [0, 0, 1, 1], [], []>} : vector<286x4xbf16>, vector<4x128xbf16>, vector<286x128xf32> -> vector<286x128xf32>
    %50 = arith.addf %44, %49 : vector<286x128xf32>
    %c0_44 = arith.constant 0 : index
    %c38 = arith.constant 38 : index
    %c0_45 = arith.constant 0 : index
    %51 = vector.load %arg1[%c0_44, %c38, %c0_45] : memref<1x324x4xbf16, #tpu.memory_space<vmem>>, vector<1x286x4xbf16>
    %52 = vector.shape_cast %51 : vector<1x286x4xbf16> to vector<286x4xbf16>
    %c8 = arith.constant 8 : index
    %c0_46 = arith.constant 0 : index
    %c0_47 = arith.constant 0 : index
    %53 = vector.load %arg2[%c8, %c0_46, %c0_47] : memref<9x4x128xbf16, #tpu.memory_space<vmem>>, vector<1x4x128xbf16>
    %54 = vector.shape_cast %53 : vector<1x4x128xbf16> to vector<4x128xbf16>
    %cst_48 = arith.constant dense<0.000000e+00> : vector<286x128xf32>
    %55 = tpu.matmul %52, %54, %cst_48 {dimension_numbers = #tpu.dot_dimension_numbers<[1], [0], [0], [1], [0, 0, 1, 1], [], []>} : vector<286x4xbf16>, vector<4x128xbf16>, vector<286x128xf32> -> vector<286x128xf32>
    %56 = arith.addf %50, %55 : vector<286x128xf32>
    %c0_49 = arith.constant 0 : index
    %c0_50 = arith.constant 0 : index
    %c0_51 = arith.constant 0 : index
    %57 = vector.load %arg4[%c0_49, %c0_50, %c0_51] : memref<1x286x128xf32, #tpu.memory_space<vmem>>, vector<1x286x128xf32>
    %58 = vector.shape_cast %57 : vector<1x286x128xf32> to vector<286x128xf32>
    %59 = vector.shape_cast %56 : vector<286x128xf32> to vector<1x286x128xf32>
    tpu.vector_store %arg4[%c0_49, %c0_50, %c0_51], %59 {strides = array<i32>} : memref<1x286x128xf32, #tpu.memory_space<vmem>>, vector<1x286x128xf32>,
    return
  }
  func.func @transform_0(%arg0: i32) -> (i32, i32, i32) {
    %c0_i32 = arith.constant 0 : i32
    %c0_i32_0 = arith.constant 0 : i32
    %c0_i32_1 = arith.constant 0 : i32
    return %arg0, %c0_i32, %c0_i32_0 : i32, i32, i32
  }
  func.func @transform_1(%arg0: i32) -> (i32, i32, i32) {
    %c0_i32 = arith.constant 0 : i32
    %c0_i32_0 = arith.constant 0 : i32
    %c0_i32_1 = arith.constant 0 : i32
    %c0_i32_2 = arith.constant 0 : i32
    return %c0_i32, %c0_i32_0, %c0_i32_1 : i32, i32, i32
  }
  func.func @transform_2(%arg0: i32) -> (i32, i32) {
    %c0_i32 = arith.constant 0 : i32
    %c0_i32_0 = arith.constant 0 : i32
    %c0_i32_1 = arith.constant 0 : i32
    return %c0_i32, %c0_i32_0 : i32, i32
  }
  func.func @transform_3(%arg0: i32) -> (i32, i32, i32) {
    %c0_i32 = arith.constant 0 : i32
    %c0_i32_0 = arith.constant 0 : i32
    %c0_i32_1 = arith.constant 0 : i32
    return %arg0, %c0_i32, %c0_i32_0 : i32, i32, i32
  }
}

</mosaic_0001>

<bundles_post_ra>
// kernel: tpu_custom_call.1
= control target key start
LH: loop header
LB: loop body
LE: loop exit
PB: predicated region body
PF: predicated region fallthrough
CT: control target
= control target key end

     0   :  { %s5126_s12 = smov 0   ;;  %s6174_s0 = inlined_call_operand.vmem [shape: bf16[2,324,4], index: 0, kind: input, shape index: {}]   ;;  %s6175_s1 = inlined_call_operand.vmem [shape: bf16[9,4,128], index: 1, kind: input, shape index: {}]   ;;  %s6176_s2 = inlined_call_operand.vmem [shape: f32[1,128], index: 2, kind: input, shape index: {}]   ;;  %s6177_s3 = inlined_call_operand.vmem [shape: f32[2,286,128], index: 3, kind: output, shape index: {}]  }
   0x1 LB: > { %s3900_s13 = sadd.s32 4294967295, %s5104_s12   ;;  %p3904_p0 = scmp.ge.s32.totalorder %s5104_s12, 1  ;;  %s5104_s12 = sphi %s5126_s12, %s13_s12  }
   0x2   : > { %p137_p1 = scmp.lt.s32.totalorder %s5104_s12, 3 }
   0x4   : > { %p138_p2 = pnand %p3904_p0, %p137_p1 }
   0x6   : > { %141 = sbr.rel (%p138_p2) target bundleno = 569 (0x239), region = 32 }
   0xd   : > { %v215_v0 = vld [vmem:[%s6175_s1] sm:$0x3]  ;;  %vm361_vm0 = vcmask 1041408   ;;  %p161_p3 = scmp.lt.s32.totalorder %s3900_s13, 1  ;;  %v4021_v2 = vld [vmem:[%s6175_s1 + $0x8] sm:$0x3] }
   0xe   : > { %4998 = vmatprep.subr.msk.bf16.mxu1 %vm361_vm0, %v215_v0  ;;  %v363_v1 = vsel %vm361_vm0, %v215_v0, 0  ;;  %5002 = vmatprep.subr.msk.bf16.mxu0 %vm361_vm0, %v4021_v2  ;;  %v5146_v3 = vsel %vm361_vm0, %v4021_v2, 0  ;;  %v4059_v4 = vld [vmem:[%s6175_s1 + $0xa] sm:$0x3]  ;;  %v3944_v5 = vld [vmem:[%s6175_s1 + $0x2] sm:$0x3] }
   0xf   : > { %4331 = vmatpush3.bf16.msra.mxu1 %v363_v1  ;;  %s6192_s13 = smov (!%p161_p3, %s3900_s13), 1  ;;  %6181 = vst [vmem:[#allocation2_spill] sm:$0xff] %v5146_v3  ;;  %4483 = vmatpush3.bf16.msra.mxu0 %v5146_v3  ;;  %vm306_vm1 = vcmask 31744   ;;  %vm1858_vm2 = vsmask.f32 6400  ;;  %v766_v10 = vsel %vm361_vm0, %v3944_v5, 0 }
  0x10   : > { %4999 = vmatprep.subr.msk.bf16.mxu1 %vm361_vm0, %v3944_v5  ;;  %s5008_s22 = smul.u32 164, %s6192_s13  ;;  %5004 = vmatprep.subr.msk.bf16.mxu0 %vm361_vm0, %v4059_v4  ;;  %v5187_v15 = vld [vmem:[%s6175_s1 + $0x4] sm:$0x3]  ;;  %v2394_v40 = vsel %vm361_vm0, %v4059_v4, 0  ;;  %v5226_v42 = vld [vmem:[%s6175_s1 + $0xc] sm:$0x3] }
  0x11   : > { %vm584_vm3 = vsmask.f32 7424  ;;  %vm2301_vm4 = vcmask 1045504   ;;  %vm987_vm5 = vcmask 1046528   ;;  %vm3054_vm6 = vsmask.f32 5376 }
  0x12   : > { %s5161_s25 = scalar_lea.vmem %s6174_s0, %s5008_s22  ;;  %vm3501_vm7 = vcmask 1044480   ;;  %s5009_s15 = smul.u32 288, %s6192_s13 }
  0x13   : > { %v179_v6 = vld [vmem:[%s5161_s25] sm:$0xf]  ;;  %v5165_v7 = vld [vmem:[%s5161_s25 + $0x4] sm:$0xf]  ;;  %v5171_v9 = vld [vmem:[%s5161_s25 + $0x8] sm:$0xff]  }
  0x14   : > { %v5168_v8 = vcombine.low %v179_v6, %v5165_v7  ;;  %v1726_v11 = vld [vmem:[%s5161_s25 + $0x8] sm:$0xe]  ;;  %v5176_v12 = vld [vmem:[%s5161_s25 + $0xc] sm:$0xf]  ;;  %v5182_v14 = vld [vmem:[%s5161_s25 + $0x10] sm:$0xff]   ;;  %s6093_s18 = scalar_lea.vmem %s6177_s3, %s5009_s15 }
  0x15   : > { %v4022_v13 = vcombine.low %v1726_v11, %v5176_v12  ;;  %v5192_v16 = vld [vmem:[%s5161_s25 + $0x10] sm:$0xff]   ;;  %v1868_v19 = vshrl.u32 %v5182_v14, 16  ;;  %v1871_v20 = vshll.u32 %v5182_v14, 16  ;;  %v5199_v21 = vld [vmem:[%s5161_s25 + $0x18] sm:$0xff]   ;;  %v5209_v29 = vld [vmem:[%s5161_s25 + $0x20] sm:$0xff]  }
  0x16   : > { %4332 = vmatprep.mubr.msk.bf16.mxu1 %vm306_vm1, %v5168_v8  ;;  %v5204_v25 = vld [vmem:[%s5161_s25 + $0x18] sm:$0xff]   ;;  %v1877_v27 = vshrl.u32 %v5199_v21, 16  ;;  %v1880_v28 = vshll.u32 %v5199_v21, 16  ;;  %v1886_v34 = vshrl.u32 %v5209_v29, 16  ;;  %v5213_v35 = vld [vmem:[%s5161_s25 + $0x20] sm:$0xff]   ;;  %v1889_v36 = vshll.u32 %v5209_v29, 16 }
  0x17   : > { %4333 = vmatmul.mubr.msk.bf16.vlgmr.msra.gmra.mrb[0].mxu1 %vm306_vm1, %v5171_v9  ;;  %v1860_v17 = vshrl.u32 %v4022_v13, 16  ;;  %v1863_v18 = vshll.u32 %v4022_v13, 16  ;;  %v1870_v24 = vrot.slane %v1868_v19, 1  ;;  %v1873_v26 = vrot.slane %v1871_v20, 2  ;;  %v5217_v37 = vld [vmem:[%s5161_s25 + $0x28] sm:$0xff]   ;;  %v5234_v46 = vld [vmem:[%s5161_s25 + $0x30] sm:$0xff]  }
  0x18   : > { %4369 = vmatpush3.bf16.msra.mxu1 %v766_v10  ;;  %4336 = vmatprep.mubr.msk.bf16.mxu1 %vm306_vm1, %v5192_v16  ;;  %v1879_v32 = vrot.slane %v1877_v27, 1  ;;  %v1882_v33 = vrot.slane %v1880_v28, 2  ;;  %v1888_v41 = vrot.slane %v1886_v34, 1  ;;  %v1891_v43 = vrot.slane %v1889_v36, 2  ;;  %v5238_v48 = vld [vmem:[%s5161_s25 + $0x28] sm:$0xff]   ;;  %v5243_v53 = vld [vmem:[%s5161_s25 + $0x38] sm:$0xff]  }
  0x19   : > { %5000 = vmatprep.subr.msk.bf16.mxu1 %vm361_vm0, %v5187_v15  ;;  %v1862_v22 = vrot.slane %v1860_v17, 1  ;;  %v1865_v23 = vrot.slane %v1863_v18, 2  ;;  %v1874_v31 = vor.u32 %v1873_v26, %v1870_v24  ;;  %v1895_v44 = vshrl.u32 %v5217_v37, 16  ;;  %v5247_v55 = vld [vmem:[%s5161_s25 + $0x30] sm:$0xff]   ;;  %v5256_v62 = vld [vmem:[%s5161_s25 + $0x40] sm:$0xff]   ;;  %v5260_v1 = vld [vmem:[%s5161_s25 + $0x48] sm:$0xff]  }
  0x1a   : > { %v1883_v39 = vor.u32 %v1882_v33, %v1879_v32  ;;  %v1898_v45 = vshll.u32 %v5217_v37, 16  ;;  %v1892_v49 = vor.u32 %v1891_v43, %v1888_v41  ;;  %v1904_v52 = vshrl.u32 %v5234_v46, 16  ;;  %v5271_v17 = vld [vmem:[%s5161_s25 + $0x38] sm:$0xff]   ;;  %v5276_v20 = vld [vmem:[%s5161_s25 + $0x50] sm:$0xff]   ;;  %v5280_v24 = vld [vmem:[%s5161_s25 + $0x40] sm:$0xff]  }
  0x1b   : > { %v1866_v30 = vor.u32 %v1865_v23, %v1862_v22  ;;  %v1897_v50 = vrot.slane %v1895_v44, 1  ;;  %v1907_v54 = vshll.u32 %v5234_v46, 16  ;;  %v1913_v59 = vshrl.u32 %v5243_v53, 16  ;;  %v5288_v32 = vld [vmem:[%s5161_s25 + $0x58] sm:$0xff]  }
  0x1c   : > { %v1884_v47 = vsel %vm1858_vm2, %v1874_v31, %v1883_v39  ;;  %v1900_v51 = vrot.slane %v1898_v45, 2  ;;  %v1893_v56 = vsel %vm1858_vm2, %v1883_v39, %v1892_v49  ;;  %v1906_v58 = vrot.slane %v1904_v52, 1  ;;  %v5296_v39 = vld [vmem:[%s5161_s25 + $0x48] sm:$0xff]   ;;  %v5302_v45 = vld [vmem:[%s5161_s25 + $0x50] sm:$0xff]  }
  0x1d   : > { %v1875_v38 = vsel %vm1858_vm2, %v1866_v30, %v1874_v31  ;;  %v1909_v60 = vrot.slane %v1907_v54, 2  ;;  %v1916_v61 = vshll.u32 %v5243_v53, 16  ;;  %v1915_v0 = vrot.slane %v1913_v59, 1 }
  0x1e   : > { %4484 = vmatprep.mubr.msk.bf16.mxu0 %vm306_vm1, %v1875_v38  ;;  %v1901_v57 = vor.u32 %v1900_v51, %v1897_v50  ;;  %v1922_v5 = vshrl.u32 %v5256_v62, 16  ;;  %v1925_v6 = vshll.u32 %v5256_v62, 16  ;;  %v1931_v18 = vshrl.u32 %v5260_v1, 16 }
  0x1f   : > { %4337 = vmatmul.mubr.msk.bf16.gmra.mrb[4].mxu1 %vm306_vm1, %v5204_v25  ;;  %4485 = vmatmul.mubr.msk.bf16.vlgmr.msra.gmra.mrb[0].mxu0 %vm306_vm1, %v1884_v47  ;;  %v1910_v2 = vor.u32 %v1909_v60, %v1906_v58  ;;  %v1918_v4 = vrot.slane %v1916_v61, 2  ;;  %v1934_v19 = vshll.u32 %v5260_v1, 16  ;;  %v1940_v26 = vshrl.u32 %v5276_v20, 16  ;;  %v2295_v47 = vld [vmem:[%s5161_s25 + $0x8] sm:$0xc] }
  0x20   : > { %4340 = vmatprep.mubr.msk.bf16.mxu1 %vm306_vm1, %v5213_v35  ;;  %4521 = vmatpush3.bf16.msra.mxu0 %v2394_v40  ;;  %v1902_v63 = vsel %vm1858_vm2, %v1892_v49, %v1901_v57  ;;  %v1924_v11 = vrot.slane %v1922_v5, 1  ;;  %v1927_v13 = vrot.slane %v1925_v6, 2  ;;  %v1943_v27 = vshll.u32 %v5276_v20, 16  ;;  %v5333_v6 = vld [vmem:[%s5161_s25 + $0x60] sm:$0xff]  }
  0x21   : > { %5005 = vmatprep.subr.msk.bf16.mxu0 %vm361_vm0, %v5226_v42  ;;  %4488 = vmatprep.mubr.msk.bf16.mxu0 %vm306_vm1, %v1893_v56  ;;  %v1911_v10 = vsel %vm1858_vm2, %v1901_v57, %v1910_v2  ;;  %v1919_v22 = vor.u32 %v1918_v4, %v1915_v0  ;;  %v1933_v28 = vrot.slane %v1931_v18, 1  ;;  %v1936_v31 = vrot.slane %v1934_v19, 2  ;;  %v5323_v0 = vld [vmem:[%s5161_s25 + $0x58] sm:$0xff]  }
  0x22   : > { %v1928_v23 = vor.u32 %v1927_v13, %v1924_v11  ;;  %v1942_v34 = vrot.slane %v1940_v26, 1  ;;  %v1945_v36 = vrot.slane %v1943_v27, 2  ;;  %v591_v38 = vshll.u32 %v5171_v9, 16 }
  0x23   : > { %v1920_v30 = vsel %vm1858_vm2, %v1910_v2, %v1919_v22  ;;  %v1937_v40 = vor.u32 %v1936_v31, %v1933_v28  ;;  %v1949_v41 = vshrl.u32 %v5288_v32, 16  ;;  %v1952_v43 = vshll.u32 %v5288_v32, 16 }
  0x24   : > { %v1929_v33 = vsel %vm1858_vm2, %v1919_v22, %v1928_v23  ;;  %v1946_v44 = vor.u32 %v1945_v36, %v1942_v34  ;;  %v5305_v49 = vrot.slane %v591_v38, 1  ;;  %v595_v50 = vshrl.u32 %v5171_v9, 16 }
  0x25   : > { %v1938_v51 = vsel %vm1858_vm2, %v1928_v23, %v1937_v40  ;;  %v1951_v52 = vrot.slane %v1949_v41, 1  ;;  %v1954_v54 = vrot.slane %v1952_v43, 2  ;;  %v598_v56 = vshll.u32 %v5192_v16, 16 }
  0x26   : > { %v1947_v57 = vsel %vm1858_vm2, %v1937_v40, %v1946_v44  ;;  %v4060_v58 = vcombine.low %v2295_v47, %v5176_v12  ;;  %v597_v59 = vor.u32 %v595_v50, %v5305_v49  ;;  %v605_v60 = vshll.u32 %v5204_v25, 16 }
  0x27   : > { %4341 = vmatmul.mubr.msk.bf16.gmra.mrb[8].mxu1 %vm306_vm1, %v5238_v48  ;;  %4489 = vmatmul.mubr.msk.bf16.gmra.mrb[4].mxu0 %vm306_vm1, %v1902_v63  ;;  %v5318_v61 = vrot.slane %v598_v56, 1  ;;  %v609_v63 = vshrl.u32 %v5204_v25, 16  ;;  %v2303_v2 = vrot.slane %v5182_v14, 2  ;;  %v612_v5 = vshll.u32 %v5213_v35, 16 }
  0x28   : > { %4344 = vmatprep.mubr.msk.bf16.mxu1 %vm306_vm1, %v5247_v55  ;;  %4492 = vmatprep.mubr.msk.bf16.mxu0 %vm306_vm1, %v1911_v10  ;;  %v5326_v4 = vrot.slane %v605_v60, 1  ;;  %v5330_v12 = vor.u32 %v1954_v54, %v1951_v52  ;;  %v619_v11 = vshll.u32 %v5238_v48, 16  ;;  %v2302_v13 = vrot.slane %v4060_v58, 2  ;;  %v5382_v52 = vld [vmem:[%s5161_s25 + $0x70] sm:$0xff]  }
  0x29   : > { %v5337_v10 = vsel %vm584_vm3, %v597_v59, %v5318_v61  ;;  %v5341_v14 = vrot.slane %v612_v5, 1  ;;  %v623_v22 = vshrl.u32 %v5238_v48, 16  ;;  %v626_v23 = vshll.u32 %v5247_v55, 16 }
  0x2a   : > { %6182 = vst [vmem:[#allocation3_spill] sm:$0xff] %v5330_v12  ;;  %v611_v18 = vor.u32 %v609_v63, %v5326_v4  ;;  %v5343_v19 = vrot.slane %v619_v11, 1  ;;  %v1956_v27 = vsel %vm1858_vm2, %v1946_v44, %v5330_v12  ;;  %v633_v31 = vshll.u32 %v5271_v17, 16  ;;  %v5375_v44 = vld [vmem:[%s5161_s25 + $0x68] sm:$0xff]  }
  0x2b   : > { %v637_v34 = vshrl.u32 %v5271_v17, 16  ;;  %v640_v40 = vshll.u32 %v5280_v24, 16  ;;  %v647_v41 = vshll.u32 %v5296_v39, 16  ;;  %v2305_v43 = vrot.slane %v5199_v21, 2 }
  0x2c   : > { %v5349_v26 = vsel %vm584_vm3, %v611_v18, %v5341_v14  ;;  %v625_v28 = vor.u32 %v623_v22, %v5343_v19  ;;  %v5367_v38 = vrot.slane %v633_v31, 1  ;;  %v2307_v47 = vrot.slane %v5209_v29, 2  ;;  %v578_v31 = vld [vmem:[%s5161_s25 + $0x8c] sm:$0xf] }
  0x2d   : > { %v5384_v54 = vrot.slane %v647_v41, 1  ;;  %v651_v56 = vshrl.u32 %v5296_v39, 16  ;;  %v2833_v58 = vsel %vm361_vm0, %v5226_v42, 0  ;;  %v587_v29 = vshll.u32 %v5168_v8, 16  ;;  %v213_v41 = vld [vmem:[%s5161_s25 + $0x88] sm:$0xf] }
  0x2e   : > { %v639_v50 = vor.u32 %v637_v34, %v5367_v38  ;;  %v661_v63 = vshll.u32 %v5323_v0, 16  ;;  %v2306_v5 = vsel %vm2301_vm4, %v2303_v2, %v2305_v43  ;;  %v2309_v42 = vrot.slane %v5217_v37, 2 }
  0x2f   : > { %4345 = vmatmul.mubr.msk.bf16.gmra.mrb[12].mxu1 %vm306_vm1, %v5271_v17  ;;  %4493 = vmatmul.mubr.msk.bf16.gmra.mrb[8].mxu0 %vm306_vm1, %v1920_v30  ;;  %v5356_v30 = vrot.slane %v626_v23, 1  ;;  %v653_v59 = vor.u32 %v651_v56, %v5384_v54  ;;  %v665_v11 = vshrl.u32 %v5323_v0, 16  ;;  %v2308_v18 = vsel %vm2301_vm4, %v2305_v43, %v2307_v47  ;;  %v981_v23 = vld [vmem:[%s5161_s25] sm:$0xe] }
  0x30   : > { %4348 = vmatprep.mubr.msk.bf16.mxu1 %vm306_vm1, %v5280_v24  ;;  %4496 = vmatprep.mubr.msk.bf16.mxu0 %vm306_vm1, %v1929_v33  ;;  %v2304_v33 = vsel %vm2301_vm4, %v2302_v13, %v2303_v2  ;;  %v5407_v13 = vld [vmem:[%s6175_s1 + $0xe] sm:$0x3]  ;;  %v5416_v22 = vrot.slane %v661_v63, 1  ;;  %v668_v37 = vshll.u32 %v5333_v6, 16  ;;  %v679_v43 = vshrl.u32 %v5375_v44, 16  ;;  %v5435_v56 = vld [vmem:[%s5161_s25 + $0x80] sm:$0xff]  }
  0x31   : > { %v5365_v36 = vsel %vm584_vm3, %v625_v28, %v5356_v30  ;;  %6183 = vst [vmem:[#allocation4_spill] sm:$0xff] %v5407_v13  ;;  %v2311_v28 = vrot.slane %v5234_v46, 2  ;;  %v5446_v63 = vcombine.low %v213_v41, %v578_v31  ;;  %v214_v31 = vld [vmem:[%s5161_s25 + $0x8c] sm:$0x7] }
  0x32   : > { %v5427_v34 = vrot.slane %v668_v37, 1 }
  0x33   : > { %v704_v12 = vshll.u32 %v5446_v63, 16 }
  0x37   : > { %4349 = vmatmul.mubr.msk.bf16.gmra.mrb[16].mxu1 %vm306_vm1, %v5296_v39  ;;  %4497 = vmatmul.mubr.msk.bf16.gmra.mrb[12].mxu0 %vm306_vm1, %v1938_v51  ;;  %v5379_v51 = vrot.slane %v640_v40, 1  ;;  %v675_v40 = vshll.u32 %v5375_v44, 16 }
  0x38   : > { %4352 = vmatprep.mubr.msk.bf16.mxu1 %vm306_vm1, %v5302_v45  ;;  %4500 = vmatprep.mubr.msk.bf16.mxu0 %vm306_vm1, %v1947_v57  ;;  %v654_v57 = vshll.u32 %v5302_v45, 16 }
  0x39   : > { %v5392_v21 = vsel %vm584_vm3, %v639_v50, %v5379_v51  ;;  %v682_v50 = vshll.u32 %v5382_v52, 16 }
  0x3a   : > { %v5396_v60 = vrot.slane %v654_v57, 1  ;;  %v5443_v57 = vrot.slane %v675_v40, 1 }
  0x3c   : > { %v5414_v2 = vsel %vm584_vm3, %v653_v59, %v5396_v60  ;;  %v589_v59 = vrot.slane %v587_v29, 1  ;;  %v2312_v29 = vsel %vm2301_vm4, %v2309_v42, %v2311_v28 }
  0x3f   : > { %4353 = vmatmul.mubr.msk.bf16.gmra.mrb[20].mxu1 %vm306_vm1, %v5323_v0  ;;  %4501 = vmatmul.mubr.msk.bf16.gmra.mrb[16].mxu0 %vm306_vm1, %v1956_v27  ;;  %v5421_v27 = vld [vmem:[%s5161_s25 + $0x78] sm:$0xff]  }
  0x40   : > { %4356 = vmatprep.mubr.msk.bf16.mxu1 %vm306_vm1, %v5333_v6  ;;  %4522 = vmatprep.mubr.msk.bf16.mxu0 %vm306_vm1, %v2304_v33  ;;  %v667_v33 = vor.u32 %v665_v11, %v5416_v22  ;;  %v3965_v11 = vcombine.low %v981_v23, %v5165_v7  ;;  %v689_v37 = vshll.u32 %v5421_v27, 16  ;;  %v693_v40 = vshrl.u32 %v5421_v27, 16 }
  0x42   : > { %v5439_v46 = vsel %vm584_vm3, %v667_v33, %v5427_v34  ;;  %v2310_v33 = vsel %vm2301_vm4, %v2307_v47, %v2309_v42  ;;  %v5466_v23 = vrot.slane %v689_v37, 1  ;;  %v700_v47 = vshrl.u32 %v5435_v56, 16 }
  0x43   : > { %6184 = vst [vmem:[#allocation5_spill] sm:$0xff] %v5439_v46  ;;  %v988_v3 = vrot.slane %v3965_v11, 1  ;;  %v3925_v46 = vcombine.low %v213_v41, %v214_v31  ;;  %v2315_v37 = vrot.slane %v5256_v62, 2  ;;  %v993_v62 = vrot.slane %v5204_v25, 1 }
  0x44   : > { %v695_v42 = vor.u32 %v693_v40, %v5466_v23  ;;  %v1001_v31 = vrot.slane %v5271_v17, 1  ;;  %v1005_v17 = vrot.slane %v5296_v39, 1 }
  0x47   : > { %4357 = vmatmul.mubr.msk.bf16.gmra.mrb[24].mxu1 %vm306_vm1, %v5375_v44  ;;  %4523 = vmatmul.mubr.msk.bf16.vlgmr.msra.gmra.mrb[0].mxu0 %vm306_vm1, %v2306_v5  ;;  %v5448_v5 = vrot.slane %v682_v50, 1 }
  0x48   : > { %4360 = vmatprep.mubr.msk.bf16.mxu1 %vm306_vm1, %v5382_v52  ;;  %4559 = vmatpush3.bf16.msra.mxu0 %v2833_v58  ;;  %v585_v58 = vshrl.u32 %v5168_v8, 16  ;;  %v696_v8 = vshll.u32 %v5435_v56, 16 }
  0x49   : > { %4526 = vmatprep.mubr.msk.bf16.mxu0 %vm306_vm1, %v2308_v18  ;;  %5006 = vmatprep.subr.msk.bf16.mxu0 %vm361_vm0, %v5407_v13  ;;  %v681_v18 = vor.u32 %v679_v43, %v5443_v57  ;;  %v2313_v13 = vrot.slane %v5243_v53, 2 }
  0x4a   : > { %v590_v43 = vor.u32 %v589_v59, %v585_v58  ;;  %v698_v50 = vrot.slane %v696_v8, 1  ;;  %v989_v59 = vrot.slane %v5171_v9, 1 }
  0x4b   : > { %v5464_v7 = vsel %vm584_vm3, %v681_v18, %v5448_v5  ;;  %v2314_v40 = vsel %vm2301_vm4, %v2311_v28, %v2313_v13  ;;  %v2316_v8 = vsel %vm2301_vm4, %v2313_v13, %v2315_v37 }
  0x4c   : > { %6185 = vst [vmem:[#allocation6_spill] sm:$0xff] %v5464_v7  ;;  %v702_v18 = vor.u32 %v700_v47, %v698_v50  ;;  %v5474_v7 = vrot.slane %v704_v12, 1  ;;  %v5478_v58 = vsel %vm584_vm3, %v695_v42, %v698_v50  ;;  %v594_v11 = vsel %vm584_vm3, %v590_v43, %v5305_v49 }
  0x4d   : > { %v991_v12 = vrot.slane %v5192_v16, 1  ;;  %v5490_v41 = vsel %vm987_vm5, %v988_v3, %v989_v59  ;;  %v995_v49 = vrot.slane %v5213_v35, 1  ;;  %v997_v3 = vrot.slane %v5238_v48, 1 }
  0x4e   : > { %v5486_v53 = vsel %vm584_vm3, %v702_v18, %v5474_v7  ;;  %v2317_v48 = vrot.slane %v5260_v1, 2  ;;  %v1003_v47 = vrot.slane %v5280_v24, 1  ;;  %v2319_v43 = vrot.slane %v5276_v20, 2 }
  0x4f   : > { %4361 = vmatmul.mubr.msk.bf16.gmra.mrb[28].mxu1 %vm306_vm1, %v5421_v27  ;;  %4527 = vmatmul.mubr.msk.bf16.gmra.mrb[4].mxu0 %vm306_vm1, %v2310_v33  ;;  %v602_v33 = vshrl.u32 %v5192_v16, 16  ;;  %v5496_v9 = vsel %vm987_vm5, %v989_v59, %v991_v12  ;;  %v5502_v16 = vsel %vm987_vm5, %v991_v12, %v993_v62  ;;  %v5507_v28 = vsel %vm987_vm5, %v993_v62, %v995_v49  ;;  %v5554_v12 = vld [vmem:[%s5161_s25 + $0x60] sm:$0xff]  }
  0x50   : > { %4364 = vmatprep.mubr.msk.bf16.mxu1 %vm306_vm1, %v5435_v56  ;;  %4530 = vmatprep.mubr.msk.bf16.mxu0 %vm306_vm1, %v2312_v29  ;;  %v1078_v29 = vsel %vm361_vm0, %v5187_v15, 0  ;;  %v5514_v13 = vsel %vm987_vm5, %v995_v49, %v997_v3  ;;  %v5527_v15 = vld [vmem:[%s6175_s1 + $0x6] sm:$0x3]  ;;  %v616_v42 = vshrl.u32 %v5213_v35, 16  ;;  %v5537_v18 = vsel %vm987_vm5, %v1001_v31, %v1003_v47 }
  0x51   : > { %v604_v25 = vor.u32 %v602_v33, %v5318_v61  ;;  %v1007_v20 = vrot.slane %v5302_v45, 1  ;;  %v5541_v59 = vsel %vm987_vm5, %v1003_v47, %v1005_v17  ;;  %v2318_v33 = vsel %vm2301_vm4, %v2315_v37, %v2317_v48 }
  0x52   : > { %v1011_v35 = vrot.slane %v5333_v6, 1  ;;  %v1013_v37 = vrot.slane %v5375_v44, 1  ;;  %v2323_v49 = vrot.slane %v5554_v12, 2  ;;  %v1017_v44 = vrot.slane %v5421_v27, 1 }
  0x53   : > { %v608_v1 = vsel %vm584_vm3, %v604_v25, %v5326_v4  ;;  %v5548_v39 = vsel %vm987_vm5, %v1005_v17, %v1007_v20  ;;  %v2320_v4 = vsel %vm2301_vm4, %v2317_v48, %v2319_v43  ;;  %v630_v25 = vshrl.u32 %v5247_v55, 16 }
  0x54   : > { %v1019_v48 = vrot.slane %v5435_v56, 1  ;;  %v1021_v47 = vrot.slane %v5446_v63, 1 }
  0x55   : > { %v632_v27 = vor.u32 %v630_v25, %v5356_v30  ;;  %v672_v25 = vshrl.u32 %v5333_v6, 16 }
  0x56   : > { %v5608_v56 = vsel %vm987_vm5, %v1019_v48, %v1021_v47 }
  0x57   : > { %4365 = vmatmul.mubr.msk.bf16.gmra.mrb[32].mxu1 %vm306_vm1, %v3925_v46  ;;  %v999_v46 = vrot.slane %v5247_v55, 1  ;;  %4531 = vmatmul.mubr.msk.bf16.gmra.mrb[8].mxu0 %vm306_vm1, %v2314_v40  ;;  %v2321_v40 = vrot.slane %v5288_v32, 2  ;;  %v5585_v32 = vld [vmem:[%s5161_s25 + $0x68] sm:$0xff]   ;;  %v636_v30 = vsel %vm584_vm3, %v632_v27, %v5367_v38  ;;  %v674_v6 = vor.u32 %v672_v25, %v5427_v34  ;;  %v5682_v34 = vld [vmem:[%s5161_s25 + $0x20] sm:$0xff]  }
  0x58   : > { %4370 = vmatprep.mubr.msk.bf16.mxu1 %vm306_vm1, %v594_v11  ;;  %4534 = vmatprep.mubr.msk.bf16.mxu0 %vm306_vm1, %v2316_v8  ;;  %v1009_v11 = vrot.slane %v5323_v0, 1  ;;  %v618_v0 = vor.u32 %v616_v42, %v5341_v14  ;;  %v5571_v14 = vsel %vm987_vm5, %v1011_v35, %v1013_v37  ;;  %v1015_v8 = vrot.slane %v5382_v52, 1 }
  0x59   : > { %v5520_v61 = vsel %vm987_vm5, %v997_v3, %v999_v46  ;;  %v5530_v50 = vsel %vm987_vm5, %v999_v46, %v1001_v31  ;;  %v2324_v31 = vsel %vm2301_vm4, %v2321_v40, %v2323_v49  ;;  %v708_v25 = vshrl.u32 %v5446_v63, 16 }
  0x5a   : > { %v5557_v62 = vsel %vm987_vm5, %v1007_v20, %v1009_v11  ;;  %v622_v3 = vsel %vm584_vm3, %v618_v0, %v5343_v19  ;;  %v5578_v46 = vsel %vm987_vm5, %v1013_v37, %v1015_v8  ;;  %v5590_v19 = vld [vmem:[%s5161_s25 + $0x70] sm:$0xff]   ;;  %v5593_v55 = vsel %vm987_vm5, %v1015_v8, %v1017_v44  ;;  %v5617_v20 = vld [vmem:[%s5161_s25 + $0x78] sm:$0xff]  }
  0x5b   : > { %v2327_v17 = vrot.slane %v5590_v19, 2  ;;  %v2609_v8 = vld [vmem:[%s5161_s25 + $0x10] sm:$0xc] }
  0x5f   : > { %4371 = vmatmul.mubr.msk.bf16.vlgmr.msra.gmra.mrb[0].mxu1 %vm306_vm1, %v5337_v10  ;;  %v5563_v10 = vsel %vm987_vm5, %v1009_v11, %v1011_v35  ;;  %4535 = vmatmul.mubr.msk.bf16.gmra.mrb[12].mxu0 %vm306_vm1, %v2318_v33  ;;  %v5622_v33 = vld [vmem:[%s5161_s25 + $0x80] sm:$0xff]  }
  0x60   : > { %4374 = vmatprep.mubr.msk.bf16.mxu1 %vm306_vm1, %v608_v1  ;;  %4407 = vmatpush3.bf16.msra.mxu1 %v1078_v29  ;;  %v2322_v29 = vsel %vm2301_vm4, %v2319_v43, %v2321_v40  ;;  %v2325_v43 = vrot.slane %v5585_v32, 2  ;;  %v644_v1 = vshrl.u32 %v5280_v24, 16  ;;  %v2329_v24 = vrot.slane %v5617_v20, 2  ;;  %v5641_v40 = vld [vmem:[%s5161_s25 + $0x90] sm:$0xff]  }
  0x61   : > { %5001 = vmatprep.subr.msk.bf16.mxu1 %vm361_vm0, %v5527_v15  ;;  %4538 = vmatprep.mubr.msk.bf16.mxu0 %vm306_vm1, %v2320_v4  ;;  %v658_v4 = vshrl.u32 %v5302_v45, 16 }
  0x62   : > { %v2326_v42 = vsel %vm2301_vm4, %v2323_v49, %v2325_v43  ;;  %v2328_v11 = vsel %vm2301_vm4, %v2325_v43, %v2327_v17  ;;  %v646_v35 = vor.u32 %v644_v1, %v5379_v51  ;;  %v2330_v0 = vsel %vm2301_vm4, %v2327_v17, %v2329_v24  ;;  %v5636_v51 = vld [vmem:[%s5161_s25 + $0x88] sm:$0xff]   ;;  %v6186_v1 = vld [vmem:[#allocation5_spill] sm:$0xff] }
  0x63   : > { %v660_v49 = vor.u32 %v658_v4, %v5396_v60  ;;  %v2333_v45 = vrot.slane %v5636_v51, 2  ;;  %v5659_v60 = vld [vmem:[%s5161_s25 + $0x98] ss:$0 sps:$4 sm:$0x11]   ;;  %v678_v43 = vsel %vm584_vm3, %v674_v6, %v5443_v57  ;;  %v686_v17 = vshrl.u32 %v5382_v52, 16  ;;  %v5700_v4 = vld [vmem:[%s5161_s25 + $0x30] sm:$0xff]  }
  0x64   : > { %v650_v38 = vsel %vm584_vm3, %v646_v35, %v5384_v54  ;;  %v2335_v54 = vrot.slane %v5641_v40, 2  ;;  %v2744_v52 = vrot.slane %v5682_v34, 2 }
  0x65   : > { %v688_v35 = vor.u32 %v686_v17, %v5448_v5  ;;  %v6188_v5 = vld [vmem:[#allocation4_spill] sm:$0xff] }
  0x67   : > { %4375 = vmatmul.mubr.msk.bf16.gmra.mrb[4].mxu1 %vm306_vm1, %v5349_v26  ;;  %4539 = vmatmul.mubr.msk.bf16.gmra.mrb[16].mxu0 %vm306_vm1, %v2322_v29  ;;  %v5599_v26 = vsel %vm987_vm5, %v1017_v44, %v1019_v48  ;;  %v2336_v29 = vsel %vm2301_vm4, %v2333_v45, %v2335_v54 }
  0x68   : > { %4378 = vmatprep.mubr.msk.bf16.mxu1 %vm306_vm1, %v622_v3  ;;  %4542 = vmatprep.mubr.msk.bf16.mxu0 %vm306_vm1, %v2324_v31  ;;  %v5652_v3 = vld [vmem:[%s5161_s25 + $0x14] sm:$0xf]  ;;  %v5667_v31 = vld [vmem:[%s5161_s25 + $0x18] sm:$0xff]  }
  0x69   : > { %v2742_v27 = vrot.slane %v5667_v31, 2 }
  0x6f   : > { %4379 = vmatmul.mubr.msk.bf16.gmra.mrb[8].mxu1 %vm306_vm1, %v5365_v36  ;;  %4543 = vmatmul.mubr.msk.bf16.gmra.mrb[20].mxu0 %vm306_vm1, %v2326_v42  ;;  %v2331_v36 = vrot.slane %v5622_v33, 2 }
  0x70   : > { %4382 = vmatprep.mubr.msk.bf16.mxu1 %vm306_vm1, %v636_v30  ;;  %4546 = vmatprep.mubr.msk.bf16.mxu0 %vm306_vm1, %v2328_v11  ;;  %v5687_v11 = vld [vmem:[%s5161_s25 + $0x28] sm:$0xff]  }
  0x71   : > { %v2332_v37 = vsel %vm2301_vm4, %v2329_v24, %v2331_v36  ;;  %v2334_v44 = vsel %vm2301_vm4, %v2331_v36, %v2333_v45  ;;  %v2746_v57 = vrot.slane %v5687_v11, 2  ;;  %v692_v24 = vsel %vm584_vm3, %v688_v35, %v5466_v23  ;;  %v5712_v23 = vld [vmem:[%s6175_s1 + $0x10] sm:$0x3]  ;;  %v5765_v35 = vld [vmem:[%s5161_s25 + $0x68] sm:$0xff]  }
  0x72   : > { %v2745_v36 = vsel %vm2301_vm4, %v2742_v27, %v2744_v52  ;;  %v2748_v45 = vrot.slane %v5700_v4, 2 }
  0x77   : > { %4383 = vmatmul.mubr.msk.bf16.gmra.mrb[12].mxu1 %vm306_vm1, %v5392_v21  ;;  %4547 = vmatmul.mubr.msk.bf16.gmra.mrb[24].mxu0 %vm306_vm1, %v2330_v0  ;;  %v664_v21 = vsel %vm584_vm3, %v660_v49, %v5416_v22  ;;  %v5664_v22 = vcombine.low %v2609_v8, %v5652_v3  ;;  %v3280_v0 = vsel %vm361_vm0, %v6188_v5, 0  ;;  %v5707_v49 = vld [vmem:[%s5161_s25 + $0x38] sm:$0xff]   ;;  %v5724_v8 = vld [vmem:[%s5161_s25 + $0x40] sm:$0xff]  }
  0x78   : > { %4386 = vmatprep.mubr.msk.bf16.mxu1 %vm306_vm1, %v650_v38  ;;  %4550 = vmatprep.mubr.msk.bf16.mxu0 %vm306_vm1, %v2332_v37  ;;  %v6187_v38 = vld [vmem:[#allocation6_spill] sm:$0xff]  ;;  %v2747_v37 = vsel %vm2301_vm4, %v2744_v52, %v2746_v57  ;;  %v2752_v6 = vrot.slane %v5724_v8, 2  ;;  %v2762_v52 = vrot.slane %v5765_v35, 2 }
  0x79   : > { %v2741_v48 = vrot.slane %v5664_v22, 2 }
  0x7b   : > { %v2743_v42 = vsel %vm2301_vm4, %v2741_v48, %v2742_v27  ;;  %v5741_v27 = vld [vmem:[%s5161_s25 + $0x50] sm:$0xff]  }
  0x7f   : > { %4387 = vmatmul.mubr.msk.bf16.gmra.mrb[16].mxu1 %vm306_vm1, %v5414_v2  ;;  %4551 = vmatmul.mubr.msk.bf16.gmra.mrb[28].mxu0 %vm306_vm1, %v2334_v44  ;;  %v2337_v2 = vrot.slane %v5659_v60, 2 }
  0x80   : > { %4390 = vmatprep.mubr.msk.bf16.mxu1 %vm306_vm1, %v664_v21  ;;  %4554 = vmatprep.mubr.msk.bf16.mxu0 %vm306_vm1, %v2336_v29  ;;  %v2749_v21 = vsel %vm2301_vm4, %v2746_v57, %v2748_v45  ;;  %v5731_v29 = vld [vmem:[%s5161_s25 + $0x48] sm:$0xff]   ;;  %v5779_v57 = vld [vmem:[%s5161_s25 + $0x70] sm:$0xff]  }
  0x81   : > { %v2338_v30 = vsel %vm2301_vm4, %v2335_v54, %v2337_v2  ;;  %v2750_v54 = vrot.slane %v5707_v49, 2  ;;  %v2754_v2 = vrot.slane %v5731_v29, 2 }
  0x83   : > { %v2751_v44 = vsel %vm2301_vm4, %v2748_v45, %v2750_v54  ;;  %v2753_v48 = vsel %vm2301_vm4, %v2750_v54, %v2752_v6 }
  0x87   : > { %4391 = vmatmul.mubr.msk.bf16.gmra.mrb[20].mxu1 %vm306_vm1, %v6186_v1  ;;  %4555 = vmatmul.mubr.msk.bf16.gmra.mrb[32].mxu0 %vm306_vm1, %v2338_v30  ;;  %v1511_v30 = vsel %vm361_vm0, %v5527_v15, 0  ;;  %v5097_v15 = vld [vmem:[%s6175_s1 + $0x8] sm:$0x3] }
  0x88   : > { %4394 = vmatprep.mubr.msk.bf16.mxu1 %vm306_vm1, %v678_v43  ;;  %4560 = vmatprep.mubr.msk.bf16.mxu0 %vm306_vm1, %v2743_v42  ;;  %v5747_v43 = vld [vmem:[%s5161_s25 + $0x58] sm:$0xff]  }
  0x89   : > { %v2758_v17 = vrot.slane %v5747_v43, 2 }
  0x8f   : > { %4395 = vmatmul.mubr.msk.bf16.gmra.mrb[24].mxu1 %vm306_vm1, %v6187_v38  ;;  %4561 = vmatmul.mubr.msk.bf16.vlgmr.msra.gmra.mrb[0].mxu0 %vm306_vm1, %v2745_v36  ;;  %v5785_v36 = vld [vmem:[%s5161_s25 + $0x78] sm:$0xff]   ;;  %v2764_v38 = vrot.slane %v5779_v57, 2 }
  0x90   : > { %4398 = vmatprep.mubr.msk.bf16.mxu1 %vm306_vm1, %v692_v24  ;;  %4597 = vmatpush3.bf16.msra.mxu0 %v3280_v0  ;;  %v2766_v5 = vrot.slane %v5785_v36, 2  ;;  %v5795_v0 = vld [vmem:[%s5161_s25 + $0x80] sm:$0xff]  }
  0x91   : > { %4564 = vmatprep.mubr.msk.bf16.mxu0 %vm306_vm1, %v2747_v37  ;;  %5007 = vmatprep.subr.msk.bf16.mxu0 %vm361_vm0, %v5712_v23  ;;  %v5801_v37 = vld [vmem:[%s5161_s25 + $0x88] sm:$0xff]   ;;  %v2768_v45 = vrot.slane %v5795_v0, 2 }
  0x92   : > { %v2770_v54 = vrot.slane %v5801_v37, 2 }
  0x97   : > { %4399 = vmatmul.mubr.msk.bf16.gmra.mrb[28].mxu1 %vm306_vm1, %v5478_v58  ;;  %4565 = vmatmul.mubr.msk.bf16.gmra.mrb[4].mxu0 %vm306_vm1, %v2749_v21  ;;  %v710_v58 = vor.u32 %v708_v25, %v5474_v7  ;;  %v2756_v7 = vrot.slane %v5741_v27, 2  ;;  %v2769_v21 = vsel %vm2301_vm4, %v2766_v5, %v2768_v45  ;;  %v5814_v25 = vld [vmem:[%s5161_s25 + $0x98] sm:$0xff]  }
  0x98   : > { %4402 = vmatprep.mubr.msk.bf16.mxu1 %vm306_vm1, %v5486_v53  ;;  %4568 = vmatprep.mubr.msk.bf16.mxu0 %vm306_vm1, %v2751_v44  ;;  %v2755_v53 = vsel %vm2301_vm4, %v2752_v6, %v2754_v2  ;;  %v2774_v6 = vrot.slane %v5814_v25, 2 }
  0x99   : > { %v2757_v1 = vsel %vm2301_vm4, %v2754_v2, %v2756_v7  ;;  %v2759_v42 = vsel %vm2301_vm4, %v2756_v7, %v2758_v17  ;;  %v3064_v2 = vshrl.u32 %v5667_v31, 16  ;;  %v5076_v7 = vld [vmem:[%s5161_s25 + $0xa0] ss:$0 sps:$4 sm:$0x11]  }
  0x9f   : > { %4403 = vmatmul.mubr.msk.bf16.gmra.mrb[32].mxu1 %vm306_vm1, %v710_v58  ;;  %4569 = vmatmul.mubr.msk.bf16.gmra.mrb[8].mxu0 %vm306_vm1, %v2753_v48  ;;  %v3059_v58 = vshll.u32 %v5664_v22, 16  ;;  %v3067_v48 = vshll.u32 %v5667_v31, 16 }
  0xa0   : > { %4408 = vmatprep.mubr.msk.bf16.mxu1 %vm306_vm1, %v5490_v41  ;;  %4572 = vmatprep.mubr.msk.bf16.mxu0 %vm306_vm1, %v2755_v53  ;;  %v5759_v41 = vld [vmem:[%s5161_s25 + $0x60] sm:$0xff]  }
  0xa1   : > { %v3145_v63 = vshrl.u32 %v5759_v41, 16 }
  0xa7   : > { %4409 = vmatmul.mubr.msk.bf16.vlgmr.msra.gmra.mrb[0].mxu1 %vm306_vm1, %v5496_v9  ;;  %4573 = vmatmul.mubr.msk.bf16.gmra.mrb[12].mxu0 %vm306_vm1, %v2757_v1  ;;  %v2760_v9 = vrot.slane %v5759_v41, 2  ;;  %v3066_v1 = vrot.slane %v3064_v2, 2  ;;  %v3594_v2 = vsel %vm361_vm0, %v5712_v23, 0  ;;  %v3118_v23 = vshrl.u32 %v5731_v29, 16 }
  0xa8   : > { %4412 = vmatprep.mubr.msk.bf16.mxu1 %vm306_vm1, %v5502_v16  ;;  %4445 = vmatpush3.bf16.msra.mxu1 %v1511_v30  ;;  %v3061_v30 = vrot.slane %v3059_v58, 3 }
  0xa9   : > { %5003 = vmatprep.subr.msk.bf16.mxu1 %vm361_vm0, %v5097_v15  ;;  %4576 = vmatprep.mubr.msk.bf16.mxu0 %vm306_vm1, %v2759_v42  ;;  %v2761_v16 = vsel %vm2301_vm4, %v2758_v17, %v2760_v9  ;;  %v2763_v24 = vsel %vm2301_vm4, %v2760_v9, %v2762_v52  ;;  %v3069_v42 = vrot.slane %v3067_v48, 3  ;;  %v3073_v15 = vshrl.u32 %v5682_v34, 16 }
  0xaa   : > { %v3076_v9 = vshll.u32 %v5682_v34, 16 }
  0xaf   : > { %4413 = vmatmul.mubr.msk.bf16.gmra.mrb[4].mxu1 %vm306_vm1, %v5507_v28  ;;  %4577 = vmatmul.mubr.msk.bf16.gmra.mrb[16].mxu0 %vm306_vm1, %v2761_v16  ;;  %v2765_v28 = vsel %vm2301_vm4, %v2762_v52, %v2764_v38  ;;  %v3070_v52 = vor.u32 %v3069_v42, %v3066_v1  ;;  %v3082_v16 = vshrl.u32 %v5687_v11, 16  ;;  %v3121_v1 = vshll.u32 %v5731_v29, 16  ;;  %v5077_v42 = vld [vmem:[%s5161_s25 + $0x8] sm:$0xfe]  }
  0xb0   : > { %4416 = vmatprep.mubr.msk.bf16.mxu1 %vm306_vm1, %v5514_v13  ;;  %4580 = vmatprep.mubr.msk.bf16.mxu0 %vm306_vm1, %v2763_v24  ;;  %v2767_v13 = vsel %vm2301_vm4, %v2764_v38, %v2766_v5  ;;  %v3085_v24 = vshll.u32 %v5687_v11, 16  ;;  %v3075_v38 = vrot.slane %v3073_v15, 2  ;;  %v3078_v5 = vrot.slane %v3076_v9, 3 }
  0xb7   : > { %4417 = vmatmul.mubr.msk.bf16.gmra.mrb[8].mxu1 %vm306_vm1, %v5520_v61  ;;  %4581 = vmatmul.mubr.msk.bf16.gmra.mrb[20].mxu0 %vm306_vm1, %v2765_v28  ;;  %v5811_v61 = vld [vmem:[%s5161_s25 + $0x90] sm:$0xff]  }
  0xb8   : > { %4420 = vmatprep.mubr.msk.bf16.mxu1 %vm306_vm1, %v5530_v50  ;;  %4584 = vmatprep.mubr.msk.bf16.mxu0 %vm306_vm1, %v2767_v13  ;;  %v2771_v50 = vsel %vm2301_vm4, %v2768_v45, %v2770_v54  ;;  %v2772_v44 = vrot.slane %v5811_v61, 2  ;;  %v3084_v13 = vrot.slane %v3082_v16, 2  ;;  %v3087_v45 = vrot.slane %v3085_v24, 3 }
  0xb9   : > { %v3123_v16 = vrot.slane %v3121_v1, 3  ;;  %v1421_v24 = vrot.slane %v5077_v42, 1  ;;  %v3147_v42 = vrot.slane %v3145_v63, 2  ;;  %v3184_v63 = vshll.u32 %v5795_v0, 16 }
  0xba   : > { %v2773_v53 = vsel %vm2301_vm4, %v2770_v54, %v2772_v44  ;;  %v3079_v54 = vor.u32 %v3078_v5, %v3075_v38  ;;  %v3127_v5 = vshrl.u32 %v5741_v27, 16 }
  0xbf   : > { %4421 = vmatmul.mubr.msk.bf16.gmra.mrb[12].mxu1 %vm306_vm1, %v5537_v18  ;;  %4585 = vmatmul.mubr.msk.bf16.gmra.mrb[24].mxu0 %vm306_vm1, %v2769_v21  ;;  %v3056_v18 = vshrl.u32 %v5664_v22, 16  ;;  %v2776_v22 = vrot.slane %v5076_v7, 2  ;;  %v3091_v21 = vshrl.u32 %v5700_v4, 16  ;;  %v3109_v7 = vshrl.u32 %v5724_v8, 16 }
  0xc0   : > { %4424 = vmatprep.mubr.msk.bf16.mxu1 %vm306_vm1, %v5541_v59  ;;  %4588 = vmatprep.mubr.msk.bf16.mxu0 %vm306_vm1, %v2771_v50  ;;  %v2775_v59 = vsel %vm2301_vm4, %v2772_v44, %v2774_v6  ;;  %v3094_v50 = vshll.u32 %v5700_v4, 16  ;;  %v3088_v44 = vor.u32 %v3087_v45, %v3084_v13  ;;  %v5079_v13 = vld [vmem:[%s5161_s25 + $0x18] sm:$0xff]   ;;  %v3136_v45 = vshrl.u32 %v5747_v43, 16 }
  0xc1   : > { %v3058_v17 = vrot.slane %v3056_v18, 2  ;;  %v3080_v18 = vsel %vm3054_vm6, %v3070_v52, %v3079_v54  ;;  %v3111_v15 = vrot.slane %v3109_v7, 2  ;;  %v3154_v7 = vshrl.u32 %v5765_v35, 16 }
  0xc2   : > { %v3096_v58 = vrot.slane %v3094_v50, 3  ;;  %v3089_v48 = vsel %vm3054_vm6, %v3079_v54, %v3088_v44  ;;  %v3139_v54 = vshll.u32 %v5747_v43, 16 }
  0xc7   : > { %4425 = vmatmul.mubr.msk.bf16.gmra.mrb[16].mxu1 %vm306_vm1, %v5548_v39  ;;  %4589 = vmatmul.mubr.msk.bf16.gmra.mrb[28].mxu0 %vm306_vm1, %v2773_v53  ;;  %v3062_v39 = vor.u32 %v3061_v30, %v3058_v17  ;;  %v3112_v17 = vshll.u32 %v5724_v8, 16 }
  0xc8   : > { %4428 = vmatprep.mubr.msk.bf16.mxu1 %vm306_vm1, %v5557_v62  ;;  %4592 = vmatprep.mubr.msk.bf16.mxu0 %vm306_vm1, %v2775_v59  ;;  %v2777_v62 = vsel %vm2301_vm4, %v2774_v6, %v2776_v22  ;;  %v3103_v6 = vshll.u32 %v5707_v49, 16  ;;  %v5078_v22 = vld [vmem:[%s5161_s25 + $0x10] sm:$0xff]  }
  0xc9   : > { %v3071_v28 = vsel %vm3054_vm6, %v3062_v39, %v3070_v52  ;;  %v3114_v9 = vrot.slane %v3112_v17, 3  ;;  %v3120_v52 = vrot.slane %v3118_v23, 2  ;;  %v3157_v17 = vshll.u32 %v5765_v35, 16  ;;  %v5082_v23 = vld [vmem:[%s5161_s25 + $0x30] sm:$0xff]  }
  0xca   : > { %v3105_v59 = vrot.slane %v3103_v6, 3 }
  0xcb   : > { %v3115_v38 = vor.u32 %v3114_v9, %v3111_v15  ;;  %v6189_v9 = vld [vmem:[#allocation2_spill] sm:$0xff] }
  0xcf   : > { %4429 = vmatmul.mubr.msk.bf16.gmra.mrb[20].mxu1 %vm306_vm1, %v5563_v10  ;;  %4593 = vmatmul.mubr.msk.bf16.gmra.mrb[32].mxu0 %vm306_vm1, %v2777_v62  ;;  %v3100_v10 = vshrl.u32 %v5707_v49, 16  ;;  %v1422_v62 = vrot.slane %v5078_v22, 1 }
  0xd0   : > { %4432 = vmatprep.mubr.msk.bf16.mxu1 %vm306_vm1, %v5571_v14  ;;  %4598 = vmatprep.mubr.msk.bf16.mxu0 %vm306_vm1, %v3071_v28  ;;  %v3093_v14 = vrot.slane %v3091_v21, 2  ;;  %v3124_v28 = vor.u32 %v3123_v16, %v3120_v52  ;;  %v5080_v21 = vld [vmem:[%s5161_s25 + $0x20] sm:$0xff]   ;;  %v3159_v52 = vrot.slane %v3157_v17, 3  ;;  %v1430_v16 = vrot.slane %v5082_v23, 1 }
  0xd1   : > { %v3102_v53 = vrot.slane %v3100_v10, 2 }
  0xd2   : > { %v3125_v6 = vsel %vm3054_vm6, %v3115_v38, %v3124_v28 }
  0xd3   : > { %v3106_v30 = vor.u32 %v3105_v59, %v3102_v53 }
  0xd5   : > { %v3116_v50 = vsel %vm3054_vm6, %v3106_v30, %v3115_v38  ;;  %v3166_v38 = vshll.u32 %v5779_v57, 16 }
  0xd7   : > { %4433 = vmatmul.mubr.msk.bf16.gmra.mrb[24].mxu1 %vm306_vm1, %v5578_v46  ;;  %4599 = vmatmul.mubr.msk.bf16.vlgmr.msra.gmra.mrb[0].mxu0 %vm306_vm1, %v3080_v18  ;;  %v3097_v46 = vor.u32 %v3096_v58, %v3093_v14  ;;  %v1424_v18 = vrot.slane %v5079_v13, 1  ;;  %v3138_v14 = vrot.slane %v3136_v45, 2  ;;  %v3141_v58 = vrot.slane %v3139_v54, 3 }
  0xd8   : > { %4436 = vmatprep.mubr.msk.bf16.mxu1 %vm306_vm1, %v5593_v55  ;;  %4635 = vmatpush3.bf16.msra.mxu0 %v3594_v2  ;;  %v1426_v2 = vrot.slane %v5080_v21, 1  ;;  %v3172_v13 = vshrl.u32 %v5785_v36, 16  ;;  %v3175_v45 = vshll.u32 %v5785_v36, 16 }
  0xd9   : > { %4602 = vmatprep.mubr.msk.bf16.mxu0 %vm306_vm1, %v3089_v48  ;;  %v3098_v55 = vsel %vm3054_vm6, %v3088_v44, %v3097_v46  ;;  %v3107_v39 = vsel %vm3054_vm6, %v3097_v46, %v3106_v30  ;;  %v3129_v44 = vrot.slane %v3127_v5, 2  ;;  %v1425_v53 = vsel %vm987_vm5, %v1422_v62, %v1424_v18  ;;  %v5081_v46 = vld [vmem:[%s5161_s25 + $0x28] sm:$0xff]  }
  0xda   : > { %v3142_v59 = vor.u32 %v3141_v58, %v3138_v14  ;;  %v1427_v30 = vsel %vm987_vm5, %v1424_v18, %v1426_v2  ;;  %v1428_v15 = vrot.slane %v5081_v46, 1  ;;  %v3174_v18 = vrot.slane %v3172_v13, 2 }
  0xdb   : > { %v3177_v14 = vrot.slane %v3175_v45, 3  ;;  %v3190_v46 = vshrl.u32 %v5801_v37, 16  ;;  %v5088_v45 = vld [vmem:[%s5161_s25 + $0x60] sm:$0xff]  }
  0xdc   : > { %v1429_v5 = vsel %vm987_vm5, %v1426_v2, %v1428_v15  ;;  %v1431_v54 = vsel %vm987_vm5, %v1428_v15, %v1430_v16 }
  0xdd   : > { %v3192_v15 = vrot.slane %v3190_v46, 2  ;;  %v3495_v46 = vld [vmem:[%s5161_s25 + $0x10] sm:$0x8] }
  0xdf   : > { %4437 = vmatmul.mubr.msk.bf16.gmra.mrb[28].mxu1 %vm306_vm1, %v5599_v26  ;;  %4603 = vmatmul.mubr.msk.bf16.gmra.mrb[4].mxu0 %vm306_vm1, %v3098_v55  ;;  %v3130_v26 = vshll.u32 %v5741_v27, 16 }
  0xe0   : > { %4440 = vmatprep.mubr.msk.bf16.mxu1 %vm306_vm1, %v5608_v56  ;;  %4606 = vmatprep.mubr.msk.bf16.mxu0 %vm306_vm1, %v3107_v39  ;;  %v1423_v56 = vsel %vm987_vm5, %v1421_v24, %v1422_v62  ;;  %v3156_v39 = vrot.slane %v3154_v7, 2  ;;  %v3163_v62 = vshrl.u32 %v5779_v57, 16  ;;  %v3193_v7 = vshll.u32 %v5801_v37, 16 }
  0xe1   : > { %v3132_v10 = vrot.slane %v3130_v26, 3 }
  0xe2   : > { %v3160_v26 = vor.u32 %v3159_v52, %v3156_v39 }
  0xe3   : > { %v3133_v48 = vor.u32 %v3132_v10, %v3129_v44  ;;  %v3168_v44 = vrot.slane %v3166_v38, 3 }
  0xe5   : > { %v3134_v1 = vsel %vm3054_vm6, %v3124_v28, %v3133_v48  ;;  %v3143_v55 = vsel %vm3054_vm6, %v3133_v48, %v3142_v59  ;;  %v5083_v28 = vld [vmem:[%s5161_s25 + $0x38] sm:$0xff]   ;;  %v3181_v48 = vshrl.u32 %v5795_v0, 16 }
  0xe7   : > { %4441 = vmatmul.mubr.msk.bf16.gmra.mrb[32].mxu1 %vm306_vm1, %v1021_v47  ;;  %4607 = vmatmul.mubr.msk.bf16.gmra.mrb[8].mxu0 %vm306_vm1, %v3116_v50  ;;  %v3148_v47 = vshll.u32 %v5759_v41, 16  ;;  %v3165_v50 = vrot.slane %v3163_v62, 2 }
  0xe8   : > { %4446 = vmatprep.mubr.msk.bf16.mxu1 %vm306_vm1, %v1423_v56  ;;  %4610 = vmatprep.mubr.msk.bf16.mxu0 %vm306_vm1, %v3125_v6  ;;  %v5084_v56 = vld [vmem:[%s5161_s25 + $0x40] sm:$0xff]   ;;  %v1432_v6 = vrot.slane %v5083_v28, 1  ;;  %v3211_v28 = vshll.u32 %v5814_v25, 16 }
  0xe9   : > { %v3150_v22 = vrot.slane %v3148_v47, 3  ;;  %v1434_v58 = vrot.slane %v5084_v56, 1  ;;  %v3169_v2 = vor.u32 %v3168_v44, %v3165_v50  ;;  %v5945_v50 = vld [vmem:[%s5161_s25 + $0xa0] ss:$0 sps:$4 sm:$0x33]  }
  0xea   : > { %v1433_v47 = vsel %vm987_vm5, %v1430_v16, %v1432_v6  ;;  %v3199_v16 = vshrl.u32 %v5811_v61, 16 }
  0xeb   : > { %v3151_v24 = vor.u32 %v3150_v22, %v3147_v42  ;;  %v1435_v17 = vsel %vm987_vm5, %v1432_v6, %v1434_v58  ;;  %v3170_v23 = vsel %vm3054_vm6, %v3160_v26, %v3169_v2  ;;  %v3186_v42 = vrot.slane %v3184_v63, 3 }
  0xec   : > { %v3201_v56 = vrot.slane %v3199_v16, 2  ;;  %v5093_v16 = vld [vmem:[%s5161_s25 + $0x78] sm:$0xff]  }
  0xed   : > { %v3152_v21 = vsel %vm3054_vm6, %v3142_v59, %v3151_v24  ;;  %v3161_v10 = vsel %vm3054_vm6, %v3151_v24, %v3160_v26  ;;  %v5085_v59 = vld [vmem:[%s5161_s25 + $0x48] sm:$0xff]   ;;  %v3202_v24 = vshll.u32 %v5811_v61, 16  ;;  %v3208_v26 = vshrl.u32 %v5814_v25, 16 }
  0xef   : > { %4447 = vmatmul.mubr.msk.bf16.vlgmr.msra.gmra.mrb[0].mxu1 %vm306_vm1, %v1425_v53  ;;  %4611 = vmatmul.mubr.msk.bf16.gmra.mrb[12].mxu0 %vm306_vm1, %v3134_v1  ;;  %v3178_v53 = vor.u32 %v3177_v14, %v3174_v18  ;;  %v3183_v1 = vrot.slane %v3181_v48, 2  ;;  %v3210_v6 = vrot.slane %v3208_v26, 2  ;;  %v3213_v18 = vrot.slane %v3211_v28, 3 }
  0xf0   : > { %4450 = vmatprep.mubr.msk.bf16.mxu1 %vm306_vm1, %v1427_v30  ;;  %4673 = vmatpush3.bf16.msra.mxu1 %v6189_v9  ;;  %v5086_v30 = vld [vmem:[%s5161_s25 + $0x50] sm:$0xff]   ;;  %v3195_v9 = vrot.slane %v3193_v7, 3  ;;  %v1442_v14 = vrot.slane %v5088_v45, 1  ;;  %v3220_v48 = vshll.u32 %v5945_v50, 16  ;;  %v5095_v45 = vld [vmem:[%s5161_s25 + $0x88] sm:$0xff]  }
  0xf1   : > { %4614 = vmatprep.mubr.msk.bf16.mxu0 %vm306_vm1, %v3143_v55  ;;  %v3179_v22 = vsel %vm3054_vm6, %v3169_v2, %v3178_v53  ;;  %v1436_v55 = vrot.slane %v5085_v59, 1  ;;  %v1438_v39 = vrot.slane %v5086_v30, 1  ;;  %v3187_v52 = vor.u32 %v3186_v42, %v3183_v1  ;;  %v5092_v7 = vld [vmem:[%s5161_s25 + $0x70] sm:$0xff]  }
  0xf2   : > { %v3196_v38 = vor.u32 %v3195_v9, %v3192_v15  ;;  %v3217_v2 = vshrl.u32 %v5945_v50, 16 }
  0xf3   : > { %v1437_v62 = vsel %vm987_vm5, %v1434_v58, %v1436_v55  ;;  %v1439_v13 = vsel %vm987_vm5, %v1436_v55, %v1438_v39  ;;  %v1446_v55 = vrot.slane %v5092_v7, 1  ;;  %v3513_v7 = vrot.slane %v5724_v8, 3 }
  0xf4   : > { %v3197_v44 = vsel %vm3054_vm6, %v3187_v52, %v3196_v38  ;;  %v3219_v30 = vrot.slane %v3217_v2, 2  ;;  %v1985_v8 = vshrl.u32 %v5617_v20, 16 }
  0xf7   : > { %4451 = vmatmul.mubr.msk.bf16.gmra.mrb[4].mxu1 %vm306_vm1, %v1429_v5  ;;  %4615 = vmatmul.mubr.msk.bf16.gmra.mrb[16].mxu0 %vm306_vm1, %v3152_v21  ;;  %v5087_v5 = vld [vmem:[%s5161_s25 + $0x58] sm:$0xff]   ;;  %v3204_v21 = vrot.slane %v3202_v24, 3 }
  0xf8   : > { %4454 = vmatprep.mubr.msk.bf16.mxu1 %vm306_vm1, %v1431_v54  ;;  %4618 = vmatprep.mubr.msk.bf16.mxu0 %vm306_vm1, %v3161_v10  ;;  %v3188_v54 = vsel %vm3054_vm6, %v3178_v53, %v3187_v52  ;;  %v1440_v10 = vrot.slane %v5087_v5, 1  ;;  %v5090_v53 = vld [vmem:[%s5161_s25 + $0x68] sm:$0xff]   ;;  %v3503_v52 = vrot.slane %v5667_v31, 3  ;;  %v1448_v5 = vrot.slane %v5093_v16, 1 }
  0xf9   : > { %v3205_v58 = vor.u32 %v3204_v21, %v3201_v56  ;;  %v1444_v42 = vrot.slane %v5090_v53, 1  ;;  %v3505_v31 = vrot.slane %v5682_v34, 3  ;;  %v5096_v56 = vld [vmem:[%s5161_s25 + $0x90] sm:$0xff]   ;;  %v1958_v34 = vshrl.u32 %v5554_v12, 16 }
  0xfa   : > { %v1441_v63 = vsel %vm987_vm5, %v1438_v39, %v1440_v10  ;;  %v1443_v59 = vsel %vm987_vm5, %v1440_v10, %v1442_v14  ;;  %v1449_v28 = vsel %vm987_vm5, %v1446_v55, %v1448_v5  ;;  %v1452_v10 = vrot.slane %v5095_v45, 1 }
  0xfb   : > { %v1445_v9 = vsel %vm987_vm5, %v1442_v14, %v1444_v42  ;;  %v1447_v24 = vsel %vm987_vm5, %v1444_v42, %v1446_v55  ;;  %v3506_v21 = vsel %vm3501_vm7, %v3503_v52, %v3505_v31  ;;  %v1967_v53 = vshrl.u32 %v5585_v32, 16 }
  0xfc   : > { %v3517_v16 = vrot.slane %v5741_v27, 3  ;;  %v2003_v27 = vshrl.u32 %v5636_v51, 16  ;;  %v2012_v45 = vshrl.u32 %v5641_v40, 16 }
  0xff   : > { %4455 = vmatmul.mubr.msk.bf16.gmra.mrb[8].mxu1 %vm306_vm1, %v1433_v47  ;;  %4619 = vmatmul.mubr.msk.bf16.gmra.mrb[20].mxu0 %vm306_vm1, %v3170_v23  ;;  %v3214_v47 = vor.u32 %v3213_v18, %v3210_v6  ;;  %v3222_v23 = vrot.slane %v3220_v48, 3  ;;  %v1454_v6 = vrot.slane %v5096_v56, 1  ;;  %v1961_v18 = vshll.u32 %v5554_v12, 16 }
 0x100   : > { %4458 = vmatprep.mubr.msk.bf16.mxu1 %vm306_vm1, %v1435_v17  ;;  %4622 = vmatprep.mubr.msk.bf16.mxu0 %vm306_vm1, %v3179_v22  ;;  %v3206_v17 = vsel %vm3054_vm6, %v3196_v38, %v3205_v58  ;;  %v4138_v22 = vcombine.low %v3495_v46, %v5652_v3  ;;  %v1960_v48 = vrot.slane %v1958_v34, 1  ;;  %v1976_v46 = vshrl.u32 %v5590_v19, 16 }
 0x101   : > { %v3215_v1 = vsel %vm3054_vm6, %v3205_v58, %v3214_v47  ;;  %v3223_v15 = vor.u32 %v3222_v23, %v3219_v30  ;;  %v3511_v58 = vrot.slane %v5707_v49, 3  ;;  %v1455_v2 = vsel %vm987_vm5, %v1452_v10, %v1454_v6 }
 0x102   : > { %v3502_v39 = vrot.slane %v4138_v22, 3  ;;  %v1979_v49 = vshll.u32 %v5590_v19, 16  ;;  %v1969_v30 = vrot.slane %v1967_v53, 1  ;;  %v1978_v22 = vrot.slane %v1976_v46, 1 }
 0x103   : > { %v3224_v3 = vsel %vm3054_vm6, %v3214_v47, %v3223_v15  ;;  %v3514_v55 = vsel %vm3501_vm7, %v3511_v58, %v3513_v7  ;;  %v3521_v56 = vrot.slane %v5759_v41, 3  ;;  %v3533_v46 = vrot.slane %v5811_v61, 3 }
 0x104   : > { %v3504_v38 = vsel %vm3501_vm7, %v3502_v39, %v3503_v52  ;;  %v1994_v39 = vshrl.u32 %v5622_v33, 16  ;;  %v1997_v52 = vshll.u32 %v5622_v33, 16 }
 0x107   : > { %4459 = vmatmul.mubr.msk.bf16.gmra.mrb[12].mxu1 %vm306_vm1, %v1437_v62  ;;  %4623 = vmatmul.mubr.msk.bf16.gmra.mrb[24].mxu0 %vm306_vm1, %v3188_v54  ;;  %v5094_v62 = vld [vmem:[%s5161_s25 + $0x80] sm:$0xff]  }
 0x108   : > { %4462 = vmatprep.mubr.msk.bf16.mxu1 %vm306_vm1, %v1439_v13  ;;  %4626 = vmatprep.mubr.msk.bf16.mxu0 %vm306_vm1, %v3197_v44  ;;  %v1450_v26 = vrot.slane %v5094_v62, 1  ;;  %v3507_v13 = vrot.slane %v5687_v11, 3  ;;  %v3509_v11 = vrot.slane %v5700_v4, 3  ;;  %v1970_v4 = vshll.u32 %v5585_v32, 16 }
 0x109   : > { %v1981_v32 = vrot.slane %v1979_v49, 2  ;;  %v3519_v62 = vrot.slane %v5747_v43, 3  ;;  %v3535_v49 = vrot.slane %v5814_v25, 3 }
 0x10a   : > { %v1451_v54 = vsel %vm987_vm5, %v1448_v5, %v1450_v26  ;;  %v3508_v44 = vsel %vm3501_vm7, %v3505_v31, %v3507_v13  ;;  %v1453_v14 = vsel %vm987_vm5, %v1450_v26, %v1452_v10  ;;  %v3510_v47 = vsel %vm3501_vm7, %v3507_v13, %v3509_v11 }
 0x10b   : > { %v3512_v12 = vsel %vm3501_vm7, %v3509_v11, %v3511_v58  ;;  %v1972_v23 = vrot.slane %v1970_v4, 2  ;;  %v1999_v26 = vrot.slane %v1997_v52, 2  ;;  %v3520_v33 = vsel %vm3501_vm7, %v3517_v16, %v3519_v62 }
 0x10c   : > { %v2006_v13 = vshll.u32 %v5636_v51, 16  ;;  %v2005_v10 = vrot.slane %v2003_v27, 1  ;;  %v2014_v51 = vrot.slane %v2012_v45, 1  ;;  %v3522_v11 = vsel %vm3501_vm7, %v3519_v62, %v3521_v56 }
 0x10d   : > { %v1973_v15 = vor.u32 %v1972_v23, %v1969_v30 }
 0x10f   : > { %4463 = vmatmul.mubr.msk.bf16.gmra.mrb[16].mxu1 %vm306_vm1, %v1441_v63  ;;  %4627 = vmatmul.mubr.msk.bf16.gmra.mrb[28].mxu0 %vm306_vm1, %v3206_v17  ;;  %v1963_v63 = vrot.slane %v1961_v18, 2  ;;  %v3515_v17 = vrot.slane %v5731_v29, 3  ;;  %v1988_v29 = vshll.u32 %v5617_v20, 16  ;;  %v1996_v20 = vrot.slane %v1994_v39, 1 }
 0x110   : > { %4466 = vmatprep.mubr.msk.bf16.mxu1 %vm306_vm1, %v1443_v59  ;;  %4630 = vmatprep.mubr.msk.bf16.mxu0 %vm306_vm1, %v3215_v1  ;;  %v6190_v1 = vld [vmem:[#allocation3_spill] sm:$0xff] }
 0x111   : > { %v1964_v59 = vor.u32 %v1963_v63, %v1960_v48  ;;  %v3516_v19 = vsel %vm3501_vm7, %v3513_v7, %v3515_v17  ;;  %v3518_v31 = vsel %vm3501_vm7, %v3515_v17, %v3517_v16  ;;  %v2000_v43 = vor.u32 %v1999_v26, %v1996_v20 }
 0x112   : > { %v2021_v48 = vshll.u32 %v5659_v60, 16  ;;  %v3531_v60 = vrot.slane %v5801_v37, 3  ;;  %v3536_v7 = vsel %vm3501_vm7, %v3533_v46, %v3535_v49  ;;  %v3537_v37 = vrot.slane %v5945_v50, 3 }
 0x113   : > { %v1965_v42 = vsel %vm1858_vm2, %v6190_v1, %v1964_v59 }
 0x114   : > { %v2023_v53 = vrot.slane %v2021_v48, 2  ;;  %v3538_v17 = vsel %vm3501_vm7, %v3535_v49, %v3537_v37 }
 0x117   : > { %4467 = vmatmul.mubr.msk.bf16.gmra.mrb[20].mxu1 %vm306_vm1, %v1445_v9  ;;  %4631 = vmatmul.mubr.msk.bf16.gmra.mrb[32].mxu0 %vm306_vm1, %v3224_v3  ;;  %v1982_v9 = vor.u32 %v1981_v32, %v1978_v22  ;;  %v1987_v3 = vrot.slane %v1985_v8, 1 }
 0x118   : > { %4470 = vmatprep.mubr.msk.bf16.mxu1 %vm306_vm1, %v1447_v24  ;;  %4636 = vmatprep.mubr.msk.bf16.mxu0 %vm306_vm1, %v3504_v38  ;;  %v1974_v24 = vsel %vm1858_vm2, %v1964_v59, %v1973_v15  ;;  %v1990_v38 = vrot.slane %v1988_v29, 2 }
 0x119   : > { %v1983_v5 = vsel %vm1858_vm2, %v1973_v15, %v1982_v9 }
 0x11f   : > { %4471 = vmatmul.mubr.msk.bf16.gmra.mrb[24].mxu1 %vm306_vm1, %v1449_v28  ;;  %4637 = vmatmul.mubr.msk.bf16.vlgmr.msra.gmra.mrb[0].mxu0 %vm306_vm1, %v3506_v21  ;;  %v1991_v28 = vor.u32 %v1990_v38, %v1987_v3  ;;  %v6085_v3 = vld [vmem:[%s6176_s2] ss:$0 sm:$0xff] }
 0x120   : > { %4474 = vmatprep.mubr.msk.bf16.mxu1 %vm306_vm1, %v1451_v54  ;;  %4640 = vmatprep.mubr.msk.bf16.mxu0 %vm306_vm1, %v3508_v44  ;;  %v2015_v54 = vshll.u32 %v5641_v40, 16  ;;  %v3523_v44 = vrot.slane %v5765_v35, 3  ;;  %v3525_v35 = vrot.slane %v5779_v57, 3  ;;  %v3529_v57 = vrot.slane %v5795_v0, 3 }
 0x121   : > { %v1992_v21 = vsel %vm1858_vm2, %v1982_v9, %v1991_v28  ;;  %v2001_v34 = vsel %vm1858_vm2, %v1991_v28, %v2000_v43  ;;  %v3534_v0 = vsel %vm3501_vm7, %v3531_v60, %v3533_v46 }
 0x122   : > { %v2017_v18 = vrot.slane %v2015_v54, 2  ;;  %v3524_v40 = vsel %vm3501_vm7, %v3521_v56, %v3523_v44  ;;  %v3532_v59 = vsel %vm3501_vm7, %v3529_v57, %v3531_v60 }
 0x124   : > { %v2018_v41 = vor.u32 %v2017_v18, %v2014_v51 }
 0x127   : > { %4475 = vmatmul.mubr.msk.bf16.gmra.mrb[28].mxu1 %vm306_vm1, %v1453_v14  ;;  %4641 = vmatmul.mubr.msk.bf16.gmra.mrb[4].mxu0 %vm306_vm1, %v3510_v47  ;;  %v3526_v47 = vsel %vm3501_vm7, %v3523_v44, %v3525_v35 }
 0x128   : > { %4478 = vmatprep.mubr.msk.bf16.mxu1 %vm306_vm1, %v1455_v2  ;;  %4644 = vmatprep.mubr.msk.bf16.mxu0 %vm306_vm1, %v3512_v12  ;;  %v3527_v2 = vrot.slane %v5785_v36, 3  ;;  %v2024_v36 = vsel %vm1858_vm2, %v2018_v41, %v2023_v53 }
 0x12a   : > { %v3528_v12 = vsel %vm3501_vm7, %v3525_v35, %v3527_v2  ;;  %v3530_v4 = vsel %vm3501_vm7, %v3527_v2, %v3529_v57 }
 0x12f   : > { %4479 = vmatmul.mubr.msk.bf16.gmra.mrb[32].mxu1 %vm306_vm1, %v1454_v6  ;;  %4645 = vmatmul.mubr.msk.bf16.gmra.mrb[8].mxu0 %vm306_vm1, %v3514_v55  ;;  %v2008_v6 = vrot.slane %v2006_v13, 2 }
 0x130   : > { %4504 = vmatprep.mubr.msk.bf16.mxu1 %vm306_vm1, %v1965_v42  ;;  %4648 = vmatprep.mubr.msk.bf16.mxu0 %vm306_vm1, %v3516_v19 }
 0x131   : > { %v2009_v14 = vor.u32 %v2008_v6, %v2005_v10 }
 0x133   : > { %v2010_v58 = vsel %vm1858_vm2, %v2000_v43, %v2009_v14  ;;  %v2019_v63 = vsel %vm1858_vm2, %v2009_v14, %v2018_v41 }
 0x137   : > { %4505 = vmatmul.mubr.msk.bf16.vlgmr.msra.gmra.mrb[20].mxu1 %vm306_vm1, %v1974_v24  ;;  %4649 = vmatmul.mubr.msk.bf16.gmra.mrb[12].mxu0 %vm306_vm1, %v3518_v31 }
 0x138   : > { %4508 = vmatprep.mubr.msk.bf16.mxu1 %vm306_vm1, %v1983_v5  ;;  %4652 = vmatprep.mubr.msk.bf16.mxu0 %vm306_vm1, %v3520_v33 }
 0x13f   : > { %4509 = vmatmul.mubr.msk.bf16.gmra.mrb[24].mxu1 %vm306_vm1, %v1992_v21  ;;  %4653 = vmatmul.mubr.msk.bf16.gmra.mrb[16].mxu0 %vm306_vm1, %v3522_v11 }
 0x140   : > { %4512 = vmatprep.mubr.msk.bf16.mxu1 %vm306_vm1, %v2001_v34  ;;  %4656 = vmatprep.mubr.msk.bf16.mxu0 %vm306_vm1, %v3524_v40 }
 0x147   : > { %4513 = vmatmul.mubr.msk.bf16.gmra.mrb[28].mxu1 %vm306_vm1, %v2010_v58  ;;  %4657 = vmatmul.mubr.msk.bf16.gmra.mrb[20].mxu0 %vm306_vm1, %v3526_v47 }
 0x148   : > { %4516 = vmatprep.mubr.msk.bf16.mxu1 %vm306_vm1, %v2019_v63  ;;  %4660 = vmatprep.mubr.msk.bf16.mxu0 %vm306_vm1, %v3528_v12 }
 0x14f   : > { %4517 = vmatmul.mubr.msk.bf16.gmra.mrb[32].mxu1 %vm306_vm1, %v2024_v36  ;;  %4661 = vmatmul.mubr.msk.bf16.gmra.mrb[24].mxu0 %vm306_vm1, %v3530_v4 }
 0x150   : > { %4664 = vmatprep.mubr.msk.bf16.mxu0 %vm306_vm1, %v3532_v59 }
 0x157   : > { %4665 = vmatmul.mubr.msk.bf16.gmra.mrb[28].mxu0 %vm306_vm1, %v3534_v0 }
 0x158   : > { %4668 = vmatprep.mubr.msk.bf16.mxu0 %vm306_vm1, %v3536_v7 }
 0x15f   : > { %4669 = vmatmul.mubr.msk.bf16.gmra.mrb[32].mxu0 %vm306_vm1, %v3538_v17 }
 0x1c2   : > { %v4448_v30 = vpop.f32.mrb[0].mxu1 }
 0x1c3   : > { %v1547_v23 = vpop.f32.mrb[1].mxu1  ;;  %v4674_v38 = vadd.f32 %v4448_v30, %v6085_v3 }
 0x1c4   : > { %v4449_v1 = vpop.f32.mrb[2].mxu1  ;;  %v4676_v5 = vadd.f32 %v6085_v3, %v1547_v23 }
 0x1c5   : > { %v1550_v61 = vpop.f32.mrb[3].mxu1  ;;  %v4678_v26 = vadd.f32 %v4449_v1, %v6085_v3 }
 0x1c6   : > { %v4680_v28 = vadd.f32 %v6085_v3, %v1550_v61 }
 0x1ca   : > { %v4452_v42 = vpop.f32.mrb[4].mxu1 }
 0x1cb   : > { %v1563_v25 = vpop.f32.mrb[5].mxu1  ;;  %v4682_v56 = vadd.f32 %v4452_v42, %v6085_v3 }
 0x1cc   : > { %v4453_v22 = vpop.f32.mrb[6].mxu1  ;;  %v4684_v21 = vadd.f32 %v6085_v3, %v1563_v25 }
 0x1cd   : > { %v1566_v32 = vpop.f32.mrb[7].mxu1  ;;  %v4686_v10 = vadd.f32 %v4453_v22, %v6085_v3 }
 0x1ce   : > { %v4688_v51 = vadd.f32 %v6085_v3, %v1566_v32 }
 0x1d2   : > { %v4456_v55 = vpop.f32.mrb[8].mxu1 }
 0x1d3   : > { %v1579_v19 = vpop.f32.mrb[9].mxu1  ;;  %v4690_v35 = vadd.f32 %v4456_v55, %v6085_v3 }
 0x1d4   : > { %v4457_v15 = vpop.f32.mrb[10].mxu1  ;;  %v4692_v58 = vadd.f32 %v6085_v3, %v1579_v19 }
 0x1d5   : > { %v1582_v8 = vpop.f32.mrb[11].mxu1  ;;  %v4694_v48 = vadd.f32 %v4457_v15, %v6085_v3 }
 0x1d6   : > { %v4696_v12 = vadd.f32 %v6085_v3, %v1582_v8 }
 0x1da   : > { %v4460_v29 = vpop.f32.mrb[12].mxu1 }
 0x1db   : > { %v1595_v9 = vpop.f32.mrb[13].mxu1  ;;  %v4698_v49 = vadd.f32 %v4460_v29, %v6085_v3 }
 0x1dc   : > { %v6070_v50 = vpop.f32.mrb[14].mxu1  ;;  %v4700_v7 = vadd.f32 %v6085_v3, %v1595_v9 }
 0x1dd   : > { %v6072_v39 = vpop.f32.mrb[15].mxu1  ;;  %v4702_v30 = vadd.f32 %v6070_v50, %v6085_v3 }
 0x1de   : > { %v4704_v61 = vadd.f32 %v6085_v3, %v6072_v39 }
 0x1e2   : > { %v6074_v52 = vpop.f32.mrb[16].mxu1 }
 0x1e3   : > { %v6076_v16 = vpop.f32.mrb[17].mxu1  ;;  %v4706_v8 = vadd.f32 %v6074_v52, %v6085_v3 }
 0x1e4   : > { %v6078_v24 = vpop.f32.mrb[18].mxu1  ;;  %v4708_v9 = vadd.f32 %v6085_v3, %v6076_v16 }
 0x1e5   : > { %v6080_v62 = vpop.f32.mrb[19].mxu1 }
 0x1f2   : > { %v4638_v20 = vpop.f32.mrb[0].mxu0 }
 0x1f3   : > { %v4675_v31 = vadd.f32 %v4674_v38, %v4638_v20  ;;  %v3630_v33 = vpop.f32.mrb[1].mxu0  ;;  %v4710_v38 = vadd.f32 %v6078_v24, %v6085_v3 }
 0x1f4   : > { %v4677_v27 = vadd.f32 %v4676_v5, %v3630_v33  ;;  %v4639_v13 = vpop.f32.mrb[2].mxu0 }
 0x1f5   : > { %3811 = vst [vmem:[%s6093_s18 + $0x10] sm:$0xff] %v4675_v31  ;;  %v4679_v43 = vadd.f32 %v4678_v26, %v4639_v13  ;;  %v3633_v45 = vpop.f32.mrb[3].mxu0  ;;  %v4712_v26 = vadd.f32 %v6085_v3, %v6080_v62 }
 0x1f6   : > { %3809 = vst [vmem:[%s6093_s18] sm:$0xff] %v4677_v27  ;;  %v4681_v54 = vadd.f32 %v4680_v28, %v3633_v45 }
 0x1f7   : > { %3812 = vst [vmem:[%s6093_s18 + $0x18] sm:$0xff] %v4679_v43 }
 0x1f8   : > { %3810 = vst [vmem:[%s6093_s18 + $0x8] sm:$0xff] %v4681_v54 }
 0x1fa   : > { %v4642_v44 = vpop.f32.mrb[4].mxu0 }
 0x1fb   : > { %v4683_v6 = vadd.f32 %v4682_v56, %v4642_v44  ;;  %v3646_v34 = vpop.f32.mrb[5].mxu0 }
 0x1fc   : > { %v4685_v18 = vadd.f32 %v4684_v21, %v3646_v34  ;;  %v4643_v11 = vpop.f32.mrb[6].mxu0 }
 0x1fd   : > { %3815 = vst [vmem:[%s6093_s18 + $0x30] sm:$0xff] %v4683_v6  ;;  %v4687_v40 = vadd.f32 %v4686_v10, %v4643_v11  ;;  %v3649_v14 = vpop.f32.mrb[7].mxu0 }
 0x1fe   : > { %3813 = vst [vmem:[%s6093_s18 + $0x20] sm:$0xff] %v4685_v18  ;;  %v4689_v41 = vadd.f32 %v4688_v51, %v3649_v14 }
 0x1ff   : > { %3816 = vst [vmem:[%s6093_s18 + $0x38] sm:$0xff] %v4687_v40 }
 0x200   : > { %3814 = vst [vmem:[%s6093_s18 + $0x28] sm:$0xff] %v4689_v41 }
 0x202   : > { %v4646_v2 = vpop.f32.mrb[8].mxu0 }
 0x203   : > { %v4691_v63 = vadd.f32 %v4690_v35, %v4646_v2  ;;  %v3662_v47 = vpop.f32.mrb[9].mxu0 }
 0x204   : > { %v4693_v53 = vadd.f32 %v4692_v58, %v3662_v47  ;;  %v4647_v57 = vpop.f32.mrb[10].mxu0 }
 0x205   : > { %3819 = vst [vmem:[%s6093_s18 + $0x50] sm:$0xff] %v4691_v63  ;;  %v4695_v36 = vadd.f32 %v4694_v48, %v4647_v57  ;;  %v3665_v60 = vpop.f32.mrb[11].mxu0 }
 0x206   : > { %3817 = vst [vmem:[%s6093_s18 + $0x40] sm:$0xff] %v4693_v53  ;;  %v4697_v4 = vadd.f32 %v4696_v12, %v3665_v60 }
 0x207   : > { %3820 = vst [vmem:[%s6093_s18 + $0x58] sm:$0xff] %v4695_v36 }
 0x208   : > { %3818 = vst [vmem:[%s6093_s18 + $0x48] sm:$0xff] %v4697_v4 }
 0x20a   : > { %v4506_v59 = vpop.f32.mrb[20].mxu1  ;;  %v4650_v37 = vpop.f32.mrb[12].mxu0 }
 0x20b   : > { %v2196_v46 = vpop.f32.mrb[21].mxu1  ;;  %v4699_v23 = vadd.f32 %v4698_v49, %v4650_v37  ;;  %v3678_v1 = vpop.f32.mrb[13].mxu0  ;;  %v4714_v24 = vadd.f32 %v4506_v59, %v6085_v3 }
 0x20c   : > { %v4507_v0 = vpop.f32.mrb[22].mxu1  ;;  %v4701_v42 = vadd.f32 %v4700_v7, %v3678_v1  ;;  %v4651_v25 = vpop.f32.mrb[14].mxu0  ;;  %v4716_v45 = vadd.f32 %v6085_v3, %v2196_v46 }
 0x20d   : > { %v2199_v17 = vpop.f32.mrb[23].mxu1  ;;  %3823 = vst [vmem:[%s6093_s18 + $0x70] sm:$0xff] %v4699_v23  ;;  %v4703_v22 = vadd.f32 %v4702_v30, %v4651_v25  ;;  %v3681_v32 = vpop.f32.mrb[15].mxu0  ;;  %v4718_v56 = vadd.f32 %v4507_v0, %v6085_v3 }
 0x20e   : > { %3821 = vst [vmem:[%s6093_s18 + $0x60] sm:$0xff] %v4701_v42  ;;  %v4705_v55 = vadd.f32 %v4704_v61, %v3681_v32  ;;  %v4720_v10 = vadd.f32 %v6085_v3, %v2199_v17 }
 0x20f   : > { %3824 = vst [vmem:[%s6093_s18 + $0x78] sm:$0xff] %v4703_v22 }
 0x210   : > { %3822 = vst [vmem:[%s6093_s18 + $0x68] sm:$0xff] %v4705_v55 }
 0x212   : > { %v4510_v19 = vpop.f32.mrb[24].mxu1  ;;  %v4654_v50 = vpop.f32.mrb[16].mxu0 }
 0x213   : > { %v2212_v15 = vpop.f32.mrb[25].mxu1  ;;  %v4707_v5 = vadd.f32 %v4706_v8, %v4654_v50  ;;  %v3694_v20 = vpop.f32.mrb[17].mxu0  ;;  %v4722_v41 = vadd.f32 %v4510_v19, %v6085_v3 }
 0x214   : > { %v4511_v29 = vpop.f32.mrb[26].mxu1  ;;  %v4709_v31 = vadd.f32 %v4708_v9, %v3694_v20  ;;  %v4655_v33 = vpop.f32.mrb[18].mxu0  ;;  %v4724_v58 = vadd.f32 %v6085_v3, %v2212_v15 }
 0x215   : > { %v2215_v39 = vpop.f32.mrb[27].mxu1  ;;  %3827 = vst [vmem:[%s6093_s18 + $0x90] sm:$0xff] %v4707_v5  ;;  %v4711_v52 = vadd.f32 %v4710_v38, %v4655_v33  ;;  %v3697_v28 = vpop.f32.mrb[19].mxu0  ;;  %v4726_v63 = vadd.f32 %v4511_v29, %v6085_v3 }
 0x216   : > { %3825 = vst [vmem:[%s6093_s18 + $0x80] sm:$0xff] %v4709_v31  ;;  %v4713_v27 = vadd.f32 %v4712_v26, %v3697_v28  ;;  %v4728_v53 = vadd.f32 %v6085_v3, %v2215_v39 }
 0x217   : > { %3828 = vst [vmem:[%s6093_s18 + $0x98] sm:$0xff] %v4711_v52 }
 0x218   : > { %3826 = vst [vmem:[%s6093_s18 + $0x88] sm:$0xff] %v4713_v27 }
 0x21a   : > { %v4514_v16 = vpop.f32.mrb[28].mxu1  ;;  %v4658_v62 = vpop.f32.mrb[20].mxu0 }
 0x21b   : > { %v2228_v13 = vpop.f32.mrb[29].mxu1  ;;  %v4715_v21 = vadd.f32 %v4714_v24, %v4658_v62  ;;  %v3710_v44 = vpop.f32.mrb[21].mxu0  ;;  %v4730_v46 = vadd.f32 %v4514_v16, %v6085_v3 }
 0x21c   : > { %v4515_v43 = vpop.f32.mrb[30].mxu1  ;;  %v4717_v6 = vadd.f32 %v4716_v45, %v3710_v44  ;;  %v4659_v34 = vpop.f32.mrb[22].mxu0  ;;  %v4732_v49 = vadd.f32 %v6085_v3, %v2228_v13 }
 0x21d   : > { %v2231_v54 = vpop.f32.mrb[31].mxu1  ;;  %3831 = vst [vmem:[%s6093_s18 + $0xb0] sm:$0xff] %v4715_v21  ;;  %v4719_v51 = vadd.f32 %v4718_v56, %v4659_v34  ;;  %v3713_v18 = vpop.f32.mrb[23].mxu0  ;;  %v4734_v7 = vadd.f32 %v4515_v43, %v6085_v3 }
 0x21e   : > { %3829 = vst [vmem:[%s6093_s18 + $0xa0] sm:$0xff] %v4717_v6  ;;  %v4721_v11 = vadd.f32 %v4720_v10, %v3713_v18  ;;  %v4736_v30 = vadd.f32 %v6085_v3, %v2231_v54 }
 0x21f   : > { %3832 = vst [vmem:[%s6093_s18 + $0xb8] sm:$0xff] %v4719_v51 }
 0x220   : > { %3830 = vst [vmem:[%s6093_s18 + $0xa8] sm:$0xff] %v4721_v11 }
 0x222   : > { %v4518_v40 = vpop.f32.mrb[32].mxu1  ;;  %v4662_v2 = vpop.f32.mrb[24].mxu0 }
 0x223   : > { %v2244_v14 = vpop.f32.mrb[33].mxu1  ;;  %v4723_v47 = vadd.f32 %v4722_v41, %v4662_v2  ;;  %v3726_v12 = vpop.f32.mrb[25].mxu0  ;;  %v4738_v22 = vadd.f32 %v4518_v40, %v6085_v3 }
 0x224   : > { %v4519_v35 = vpop.f32.mrb[34].mxu1  ;;  %v4725_v57 = vadd.f32 %v4724_v58, %v3726_v12  ;;  %v4663_v36 = vpop.f32.mrb[26].mxu0  ;;  %v4740_v32 = vadd.f32 %v6085_v3, %v2244_v14 }
 0x225   : > { %v2247_v48 = vpop.f32.mrb[35].mxu1  ;;  %3835 = vst [vmem:[%s6093_s18 + $0xd0] sm:$0xff] %v4723_v47  ;;  %v4727_v60 = vadd.f32 %v4726_v63, %v4663_v36  ;;  %v3729_v4 = vpop.f32.mrb[27].mxu0  ;;  %v4742_v19 = vadd.f32 %v4519_v35, %v6085_v3 }
 0x226   : > { %3833 = vst [vmem:[%s6093_s18 + $0xc0] sm:$0xff] %v4725_v57  ;;  %v4729_v59 = vadd.f32 %v4728_v53, %v3729_v4  ;;  %v4744_v29 = vadd.f32 %v6085_v3, %v2247_v48 }
 0x227   : > { %3836 = vst [vmem:[%s6093_s18 + $0xd8] sm:$0xff] %v4727_v60 }
 0x228   : > { %3834 = vst [vmem:[%s6093_s18 + $0xc8] sm:$0xff] %v4729_v59 }
 0x22a   : > { %v4666_v0 = vpop.f32.mrb[28].mxu0 }
 0x22b   : > { %v4731_v37 = vadd.f32 %v4730_v46, %v4666_v0  ;;  %v3742_v17 = vpop.f32.mrb[29].mxu0 }
 0x22c   : > { %v4733_v23 = vadd.f32 %v4732_v49, %v3742_v17  ;;  %v4667_v1 = vpop.f32.mrb[30].mxu0 }
 0x22d   : > { %3839 = vst [vmem:[%s6093_s18 + $0xf0] sm:$0xff] %v4731_v37  ;;  %v4735_v61 = vadd.f32 %v4734_v7, %v4667_v1  ;;  %v3745_v42 = vpop.f32.mrb[31].mxu0 }
 0x22e   : > { %3837 = vst [vmem:[%s6093_s18 + $0xe0] sm:$0xff] %v4733_v23  ;;  %v4737_v25 = vadd.f32 %v4736_v30, %v3745_v42 }
 0x22f   : > { %3840 = vst [vmem:[%s6093_s18 + $0xf8] sm:$0xff] %v4735_v61 }
 0x230   : > { %3838 = vst [vmem:[%s6093_s18 + $0xe8] sm:$0xff] %v4737_v25 }
 0x232   : > { %v4670_v55 = vpop.f32.mrb[32].mxu0 }
 0x233   : > { %v4739_v15 = vadd.f32 %v4738_v22, %v4670_v55  ;;  %v3758_v8 = vpop.f32.mrb[33].mxu0 }
 0x234   : > { %v4741_v9 = vadd.f32 %v4740_v32, %v3758_v8  ;;  %v4671_v50 = vpop.f32.mrb[34].mxu0 }
 0x235   : > { %3843 = vst [vmem:[%s6093_s18 + $0x110] sm:$0xff] %v4739_v15  ;;  %v4743_v39 = vadd.f32 %v4742_v19, %v4671_v50  ;;  %v3761_v38 = vpop.f32.mrb[35].mxu0 }
 0x236   : > { %3841 = vst [vmem:[%s6093_s18 + $0x100] sm:$0xff] %v4741_v9  ;;  %v4745_v5 = vadd.f32 %v4744_v29, %v3761_v38 }
 0x237   : > { %3844 = vst [vmem:[%s6093_s18 + $0x118] sm:$0x3f] %v4743_v39 }
 0x238   : > { %3842 = vst [vmem:[%s6093_s18 + $0x108] sm:$0xff] %v4745_v5 }
 0x239 PF: > { %s13_s12 = sadd.s32 1, %s5104_s12  }
 0x23a   : > { %p10_p4 = scmp.ge.s32.totalorder %s13_s12, 4  }
 0x23c   :  { %12 = sbr.rel (!%p10_p4) target bundleno = 1 (0x1), region = 70 }

</bundles_post_ra>
